<compile_context>
chip_gen: v7x
topology: tpu7x:2x2x1
jax: 0.10.0
libtpu: 0.0.40
codegen_flags: <defaults>
</compile_context>

<pallas_src>
import functools

import jax
import jax.numpy as jnp
from jax.experimental import pallas as pl
from jax.experimental.pallas import tpu as pltpu


def attend_kernel(x_ref, wc_ref, o_ref, acc_ref, *, num_heads):
    # x_ref  : (TB, C, S)      batch rows, native dtype
    # wc_ref : (1, C, 1)       per-channel grouped-conv weights, f32
    # o_ref  : (TB, C)  or (TB, 1, C)   per-channel weighted spatial average
    # acc_ref: (TB, C) f32     scratch accumulator (avoids a concat epilogue)
    _, C, _ = x_ref.shape
    cph = C // num_heads

    # Single upcast + single pre-scale of the dense tile; the wc lane-broadcast
    # is hoisted out of the unrolled head loop.  The conv bias is omitted: it
    # is constant over the spatial axis, so the softmax below cancels it.
    xf = x_ref[...].astype(jnp.float32)          # (TB, C, S)  (no-op for f32 x)
    xw = xf * wc_ref[...]                        # (TB, C, S)  logit pre-products

    for n in range(num_heads):                   # NH is small & static
        sl = slice(n * cph, (n + 1) * cph)

        # Grouped 1x1 conv logits for head n (reduce the head's channels).
        logit = jnp.sum(xw[:, sl, :], axis=1, keepdims=True)      # (TB, 1, S)

        # Max-stabilized softmax over the spatial axis; the normalization is
        # folded into the final per-head scale (no S-wide divide).
        m = jnp.max(logit, axis=-1, keepdims=True)                # (TB, 1, 1)
        e = jnp.exp(logit - m)                                    # (TB, 1, S)
        num = jnp.sum(xf[:, sl, :] * e, axis=-1)                  # (TB, CPH)
        inv = pl.reciprocal(jnp.sum(e, axis=-1), approx=False)    # (TB, 1)

        # Write this head's result straight into its lane slice (no concat).
        acc_ref[:, sl] = num * inv

    res = acc_ref[...]
    if len(o_ref.shape) == 3:                    # rare fallback layout (TB,1,C)
        res = res[:, None, :]
    o_ref[...] = res.astype(o_ref.dtype)


def _round_up_8(n):
    return ((n + 7) // 8) * 8


def _vmem_capacity_bytes():
    """Physical VMEM per TensorCore; conservative v7x-sized fallback."""
    try:
        cap = int(pltpu.get_tpu_info().vmem_capacity_bytes)
        if cap > 0:
            return cap
    except Exception:
        pass
    return 64 << 20  # v7x has the smallest physical VMEM (64 MiB)


def _plan_tiles(B, C, S, in_itemsize):
    """Choose (TB batch rows per grid step, vmem_limit_bytes).

    HBM-bound kernel: amortize the ~0.35 us per-step overhead with the largest
    x tile whose double-buffered DMA window + f32 temporaries (upcast tile,
    pre-scaled tile, sublane-padded per-head buffers) fit comfortably inside
    the scoped-VMEM limit we request -- which itself is derived from the
    physical VMEM of this generation (128 MiB on v5e/v6e, 64 MiB on v7x).
    """
    cap = _vmem_capacity_bytes()
    vmem_limit = min(int(cap * 0.7), 96 << 20)    # scoped limit we will request
    usable = int(vmem_limit * 0.7)                # headroom for Mosaic internals

    in_row = C * S * in_itemsize                  # streamed x (double-buffered)
    f32_row = C * S * 4                           # xf / xw f32 tile copies
    head_row = 4 * 8 * S * 4                      # sublane-padded per-head temps
    out_row = 4 * C * 4                           # acc scratch + output (tiny)
    per_row = 2 * in_row + 2 * f32_row + head_row + out_row

    if per_row > vmem_limit:
        # TODO(synk): needs an "arbitrary" S grid axis with online-softmax
        #             accumulators for very large H*W; not implemented.
        raise NotImplementedError(
            f"one batch row needs ~{per_row} B of VMEM > budget {vmem_limit} B")

    tb = max(1, usable // per_row)
    if tb >= B:
        # Whole batch fits: still split so both v7x TensorCores get >= 2
        # pipelined steps each when B is large enough to afford it.
        tb = B
        if B >= 32:
            tb = _round_up_8(-(-B // 4))
        elif B >= 16:
            tb = _round_up_8(-(-B // 2))
    else:
        # VMEM-limited.  Try to keep >= 4 grid steps as long as each tile stays
        # >= ~2 MiB of input (per-step overhead < ~10% on every generation).
        if -(-B // tb) < 4:
            tb_q = -(-B // 4)
            if tb_q * in_row >= (2 << 20):
                tb = min(tb, tb_q)
        # The dense (TB, C) output block wants its sublane dim % 8 == 0.
        if tb % 8 != 0:
            if tb > 8:
                tb = (tb // 8) * 8
            elif 8 * per_row <= vmem_limit:
                tb = 8
            # else keep tb; wrapper falls back to a (B, 1, C) output layout.
    tb = max(1, min(tb, B))
    return tb, int(vmem_limit)


def attend_module_forward(x_nchw, conv_w, conv_b=None):
    """AttendModule.forward (return_weight=False).

    x_nchw: (B, C, H, W) in its native dtype (bf16 is fastest: the kernel is
    HBM-read-bound on x); conv_w: (NH, CPH); conv_b: (NH,) accepted for API
    parity but mathematically redundant under the spatial softmax.
    Returns mus of shape (B, C, 1, 1).
    """
    B, C, H, W = x_nchw.shape
    NH, CPH = conv_w.shape
    assert C == NH * CPH
    S = H * W

    x = x_nchw.reshape(B, C, S)                    # free view; native dtype
    wc = conv_w.reshape(1, C, 1).astype(jnp.float32)

    tb, vmem_limit = _plan_tiles(B, C, S, x.dtype.itemsize)
    nblk = pl.cdiv(B, tb)

    dense_out = (tb % 8 == 0) or (tb == B)
    if dense_out:
        out_shape = jax.ShapeDtypeStruct((B, C), x.dtype)
        out_spec = pl.BlockSpec((tb, C), lambda i: (i, 0))
    else:
        # Rare fallback (tiny VMEM-forced tb): (1, C) trailing dims are always
        # legal but store via masked vst; acceptable since output bytes are tiny.
        out_shape = jax.ShapeDtypeStruct((B, 1, C), x.dtype)
        out_spec = pl.BlockSpec((tb, 1, C), lambda i: (i, 0, 0))

    out = pl.pallas_call(
        functools.partial(attend_kernel, num_heads=NH),
        out_shape=out_shape,
        grid_spec=pltpu.PrefetchScalarGridSpec(
            num_scalar_prefetch=0,
            grid=(nblk,),
            in_specs=[
                pl.BlockSpec((tb, C, S), lambda i: (i, 0, 0)),  # contiguous x tile
                pl.BlockSpec((1, C, 1), lambda i: (0, 0, 0)),   # resident weights
            ],
            out_specs=out_spec,
            scratch_shapes=[pltpu.VMEM((tb, C), jnp.float32)],
        ),
        compiler_params=pltpu.CompilerParams(
            dimension_semantics=("parallel",),
            vmem_limit_bytes=vmem_limit,
        ),
    )(x, wc)

    return out.reshape(B, C, 1, 1)


def attend_module_reference(x_nchw, conv_w, conv_b):
    """Pure-JAX reference of AttendModule.forward (with bias, as in PyTorch)."""
    B, C, H, W = x_nchw.shape
    NH, CPH = conv_w.shape
    xr = x_nchw.reshape(B, NH, CPH, H * W).astype(jnp.float32)
    logits = (jnp.einsum("bgcs,gc->bgs", xr, conv_w.astype(jnp.float32))
              + conv_b.astype(jnp.float32)[None, :, None])
    p = jax.nn.softmax(logits, axis=-1)
    mus = jnp.einsum("bgcs,bgs->bgc", xr, p)
    return mus.reshape(B, C, 1, 1)


if __name__ == "__main__":
    # Small shapes consistent with the module: num_features=16, num_heads=4.
    NH = 4
    key = jax.random.PRNGKey(0)
    kx, kw, kb = jax.random.split(key, 3)

    B, C, H, W = 16, 16, 16, 16
    CPH = C // NH
    x = jax.random.normal(kx, (B, C, H, W), dtype=jnp.float32)
    # Deterministic synthetic params (kaiming-normal-ish fan_out scale).
    conv_w = jax.random.normal(kw, (NH, CPH), dtype=jnp.float32) * jnp.sqrt(2.0 / NH)
    conv_b = jax.random.normal(kb, (NH,), dtype=jnp.float32) * 0.1

    # f32 path.
    mus = jax.block_until_ready(attend_module_forward(x, conv_w, conv_b))
    ref = attend_module_reference(x, conv_w, conv_b)
    assert mus.shape == (B, C, 1, 1)
    assert jnp.allclose(mus, ref, atol=1e-5, rtol=1e-5), float(
        jnp.max(jnp.abs(mus - ref)))

    # Odd batch: exercises a masked partial last tile.
    B2 = 20
    x2 = jax.random.normal(kx, (B2, C, H, W), dtype=jnp.float32)
    mus2 = jax.block_until_ready(attend_module_forward(x2, conv_w, conv_b))
    ref2 = attend_module_reference(x2, conv_w, conv_b)
    assert mus2.shape == (B2, C, 1, 1)
    assert jnp.allclose(mus2, ref2, atol=1e-5, rtol=1e-5)

    # Native bf16 path (no wrapper-side upcast; kernel upcasts once per tile).
    x_bf = x.astype(jnp.bfloat16)
    mus_bf = jax.block_until_ready(attend_module_forward(x_bf, conv_w, conv_b))
    ref_bf = attend_module_reference(x_bf, conv_w, conv_b)
    assert mus_bf.shape == (B, C, 1, 1)
    assert jnp.allclose(mus_bf.astype(jnp.float32), ref_bf, atol=2e-2, rtol=2e-2)

    print("KERNEL_OK")
</pallas_src>

<mosaic_0001>
module attributes {stable_mosaic.version = 11 : i64} {
  func.func @attend_kernel(%arg0: i32, %arg1: memref<8x16x256xf32, #tpu.memory_space<vmem>>, %arg2: memref<1x16x1xf32, #tpu.memory_space<vmem>>, %arg3: memref<8x16xf32, #tpu.memory_space<vmem>>, %arg4: memref<8x16xf32, #tpu.memory_space<vmem>>) attributes {dimension_semantics = [#tpu.dimension_semantics<parallel>], iteration_bounds = array<i64: 2>, scalar_prefetch = 0 : i64, scratch_operands = 1 : i64, tpu.core_type = #tpu.core_type<tc>, window_params = [{transform_indices = @transform_0, window_bounds = array<i64: 8, 16, 256>}, {pipeline_mode = #tpu.pipeline_mode<synchronous>, transform_indices = @transform_1, window_bounds = array<i64: 1, 16, 1>}, {transform_indices = @transform_2, window_bounds = array<i64: 8, 16>}]} {
    %c0 = arith.constant 0 : index
    %c0_0 = arith.constant 0 : index
    %c0_1 = arith.constant 0 : index
    %0 = vector.load %arg1[%c0, %c0_0, %c0_1] : memref<8x16x256xf32, #tpu.memory_space<vmem>>, vector<8x16x256xf32>
    %c0_2 = arith.constant 0 : index
    %c0_3 = arith.constant 0 : index
    %c0_4 = arith.constant 0 : index
    %1 = vector.load %arg2[%c0_2, %c0_3, %c0_4] : memref<1x16x1xf32, #tpu.memory_space<vmem>>, vector<1x16x1xf32>
    %2 = vector.broadcast %1 : vector<1x16x1xf32> to vector<8x16x256xf32>
    %3 = arith.mulf %0, %2 : vector<8x16x256xf32>
    %4 = vector.extract_strided_slice %3 {offsets = [0, 0, 0], sizes = [8, 4, 256], strides = [1, 1, 1]} : vector<8x16x256xf32> to vector<8x4x256xf32>
    %cst = arith.constant dense<0.000000e+00> : vector<8x256xf32>
    %5 = vector.multi_reduction <add>, %4, %cst [1] : vector<8x4x256xf32> to vector<8x256xf32>
    %6 = vector.shape_cast %5 : vector<8x256xf32> to vector<8x1x256xf32>
    %cst_5 = arith.constant dense<0xFF800000> : vector<8x1xf32>
    %7 = vector.multi_reduction <maximumf>, %6, %cst_5 [2] : vector<8x1x256xf32> to vector<8x1xf32>
    %8 = vector.shape_cast %7 : vector<8x1xf32> to vector<8x1x1xf32>
    %9 = vector.broadcast %8 : vector<8x1x1xf32> to vector<8x1x256xf32>
    %10 = arith.subf %6, %9 : vector<8x1x256xf32>
    %11 = math.exp %10 : vector<8x1x256xf32>
    %12 = vector.extract_strided_slice %0 {offsets = [0, 0, 0], sizes = [8, 4, 256], strides = [1, 1, 1]} : vector<8x16x256xf32> to vector<8x4x256xf32>
    %13 = vector.broadcast %11 : vector<8x1x256xf32> to vector<8x4x256xf32>
    %14 = arith.mulf %12, %13 : vector<8x4x256xf32>
    %cst_6 = arith.constant dense<0.000000e+00> : vector<8x4xf32>
    %15 = vector.multi_reduction <add>, %14, %cst_6 [2] : vector<8x4x256xf32> to vector<8x4xf32>
    %cst_7 = arith.constant dense<0.000000e+00> : vector<8x1xf32>
    %16 = vector.multi_reduction <add>, %11, %cst_7 [2] : vector<8x1x256xf32> to vector<8x1xf32>
    %17 = tpu.reciprocal %16 : vector<8x1xf32> -> vector<8x1xf32>
    %18 = vector.broadcast %17 : vector<8x1xf32> to vector<8x4xf32>
    %19 = arith.mulf %15, %18 : vector<8x4xf32>
    %c0_8 = arith.constant 0 : index
    %c0_9 = arith.constant 0 : index
    %20 = vector.load %arg4[%c0_8, %c0_9] : memref<8x16xf32, #tpu.memory_space<vmem>>, vector<8x4xf32>
    tpu.vector_store %arg4[%c0_8, %c0_9], %19 {strides = array<i32>} : memref<8x16xf32, #tpu.memory_space<vmem>>, vector<8x4xf32>,
    %21 = vector.extract_strided_slice %3 {offsets = [0, 4, 0], sizes = [8, 4, 256], strides = [1, 1, 1]} : vector<8x16x256xf32> to vector<8x4x256xf32>
    %cst_10 = arith.constant dense<0.000000e+00> : vector<8x256xf32>
    %22 = vector.multi_reduction <add>, %21, %cst_10 [1] : vector<8x4x256xf32> to vector<8x256xf32>
    %23 = vector.shape_cast %22 : vector<8x256xf32> to vector<8x1x256xf32>
    %cst_11 = arith.constant dense<0xFF800000> : vector<8x1xf32>
    %24 = vector.multi_reduction <maximumf>, %23, %cst_11 [2] : vector<8x1x256xf32> to vector<8x1xf32>
    %25 = vector.shape_cast %24 : vector<8x1xf32> to vector<8x1x1xf32>
    %26 = vector.broadcast %25 : vector<8x1x1xf32> to vector<8x1x256xf32>
    %27 = arith.subf %23, %26 : vector<8x1x256xf32>
    %28 = math.exp %27 : vector<8x1x256xf32>
    %29 = vector.extract_strided_slice %0 {offsets = [0, 4, 0], sizes = [8, 4, 256], strides = [1, 1, 1]} : vector<8x16x256xf32> to vector<8x4x256xf32>
    %30 = vector.broadcast %28 : vector<8x1x256xf32> to vector<8x4x256xf32>
    %31 = arith.mulf %29, %30 : vector<8x4x256xf32>
    %cst_12 = arith.constant dense<0.000000e+00> : vector<8x4xf32>
    %32 = vector.multi_reduction <add>, %31, %cst_12 [2] : vector<8x4x256xf32> to vector<8x4xf32>
    %cst_13 = arith.constant dense<0.000000e+00> : vector<8x1xf32>
    %33 = vector.multi_reduction <add>, %28, %cst_13 [2] : vector<8x1x256xf32> to vector<8x1xf32>
    %34 = tpu.reciprocal %33 : vector<8x1xf32> -> vector<8x1xf32>
    %35 = vector.broadcast %34 : vector<8x1xf32> to vector<8x4xf32>
    %36 = arith.mulf %32, %35 : vector<8x4xf32>
    %c0_14 = arith.constant 0 : index
    %c4 = arith.constant 4 : index
    %37 = vector.load %arg4[%c0_14, %c4] : memref<8x16xf32, #tpu.memory_space<vmem>>, vector<8x4xf32>
    tpu.vector_store %arg4[%c0_14, %c4], %36 {strides = array<i32>} : memref<8x16xf32, #tpu.memory_space<vmem>>, vector<8x4xf32>,
    %38 = vector.extract_strided_slice %3 {offsets = [0, 8, 0], sizes = [8, 4, 256], strides = [1, 1, 1]} : vector<8x16x256xf32> to vector<8x4x256xf32>
    %cst_15 = arith.constant dense<0.000000e+00> : vector<8x256xf32>
    %39 = vector.multi_reduction <add>, %38, %cst_15 [1] : vector<8x4x256xf32> to vector<8x256xf32>
    %40 = vector.shape_cast %39 : vector<8x256xf32> to vector<8x1x256xf32>
    %cst_16 = arith.constant dense<0xFF800000> : vector<8x1xf32>
    %41 = vector.multi_reduction <maximumf>, %40, %cst_16 [2] : vector<8x1x256xf32> to vector<8x1xf32>
    %42 = vector.shape_cast %41 : vector<8x1xf32> to vector<8x1x1xf32>
    %43 = vector.broadcast %42 : vector<8x1x1xf32> to vector<8x1x256xf32>
    %44 = arith.subf %40, %43 : vector<8x1x256xf32>
    %45 = math.exp %44 : vector<8x1x256xf32>
    %46 = vector.extract_strided_slice %0 {offsets = [0, 8, 0], sizes = [8, 4, 256], strides = [1, 1, 1]} : vector<8x16x256xf32> to vector<8x4x256xf32>
    %47 = vector.broadcast %45 : vector<8x1x256xf32> to vector<8x4x256xf32>
    %48 = arith.mulf %46, %47 : vector<8x4x256xf32>
    %cst_17 = arith.constant dense<0.000000e+00> : vector<8x4xf32>
    %49 = vector.multi_reduction <add>, %48, %cst_17 [2] : vector<8x4x256xf32> to vector<8x4xf32>
    %cst_18 = arith.constant dense<0.000000e+00> : vector<8x1xf32>
    %50 = vector.multi_reduction <add>, %45, %cst_18 [2] : vector<8x1x256xf32> to vector<8x1xf32>
    %51 = tpu.reciprocal %50 : vector<8x1xf32> -> vector<8x1xf32>
    %52 = vector.broadcast %51 : vector<8x1xf32> to vector<8x4xf32>
    %53 = arith.mulf %49, %52 : vector<8x4xf32>
    %c0_19 = arith.constant 0 : index
    %c8 = arith.constant 8 : index
    %54 = vector.load %arg4[%c0_19, %c8] : memref<8x16xf32, #tpu.memory_space<vmem>>, vector<8x4xf32>
    tpu.vector_store %arg4[%c0_19, %c8], %53 {strides = array<i32>} : memref<8x16xf32, #tpu.memory_space<vmem>>, vector<8x4xf32>,
    %55 = vector.extract_strided_slice %3 {offsets = [0, 12, 0], sizes = [8, 4, 256], strides = [1, 1, 1]} : vector<8x16x256xf32> to vector<8x4x256xf32>
    %cst_20 = arith.constant dense<0.000000e+00> : vector<8x256xf32>
    %56 = vector.multi_reduction <add>, %55, %cst_20 [1] : vector<8x4x256xf32> to vector<8x256xf32>
    %57 = vector.shape_cast %56 : vector<8x256xf32> to vector<8x1x256xf32>
    %cst_21 = arith.constant dense<0xFF800000> : vector<8x1xf32>
    %58 = vector.multi_reduction <maximumf>, %57, %cst_21 [2] : vector<8x1x256xf32> to vector<8x1xf32>
    %59 = vector.shape_cast %58 : vector<8x1xf32> to vector<8x1x1xf32>
    %60 = vector.broadcast %59 : vector<8x1x1xf32> to vector<8x1x256xf32>
    %61 = arith.subf %57, %60 : vector<8x1x256xf32>
    %62 = math.exp %61 : vector<8x1x256xf32>
    %63 = vector.extract_strided_slice %0 {offsets = [0, 12, 0], sizes = [8, 4, 256], strides = [1, 1, 1]} : vector<8x16x256xf32> to vector<8x4x256xf32>
    %64 = vector.broadcast %62 : vector<8x1x256xf32> to vector<8x4x256xf32>
    %65 = arith.mulf %63, %64 : vector<8x4x256xf32>
    %cst_22 = arith.constant dense<0.000000e+00> : vector<8x4xf32>
    %66 = vector.multi_reduction <add>, %65, %cst_22 [2] : vector<8x4x256xf32> to vector<8x4xf32>
    %cst_23 = arith.constant dense<0.000000e+00> : vector<8x1xf32>
    %67 = vector.multi_reduction <add>, %62, %cst_23 [2] : vector<8x1x256xf32> to vector<8x1xf32>
    %68 = tpu.reciprocal %67 : vector<8x1xf32> -> vector<8x1xf32>
    %69 = vector.broadcast %68 : vector<8x1xf32> to vector<8x4xf32>
    %70 = arith.mulf %66, %69 : vector<8x4xf32>
    %c0_24 = arith.constant 0 : index
    %c12 = arith.constant 12 : index
    %71 = vector.load %arg4[%c0_24, %c12] : memref<8x16xf32, #tpu.memory_space<vmem>>, vector<8x4xf32>
    tpu.vector_store %arg4[%c0_24, %c12], %70 {strides = array<i32>} : memref<8x16xf32, #tpu.memory_space<vmem>>, vector<8x4xf32>,
    %c0_25 = arith.constant 0 : index
    %c0_26 = arith.constant 0 : index
    %72 = vector.load %arg4[%c0_25, %c0_26] : memref<8x16xf32, #tpu.memory_space<vmem>>, vector<8x16xf32>
    %c0_27 = arith.constant 0 : index
    %c0_28 = arith.constant 0 : index
    %73 = vector.load %arg3[%c0_27, %c0_28] : memref<8x16xf32, #tpu.memory_space<vmem>>, vector<8x16xf32>
    tpu.vector_store %arg3[%c0_27, %c0_28], %72 {strides = array<i32>} : memref<8x16xf32, #tpu.memory_space<vmem>>, vector<8x16xf32>,
    return
  }
  func.func @transform_0(%arg0: i32) -> (i32, i32, i32) {
    %c0_i32 = arith.constant 0 : i32
    %c0_i32_0 = arith.constant 0 : i32
    %c0_i32_1 = arith.constant 0 : i32
    return %arg0, %c0_i32, %c0_i32_0 : i32, i32, i32
  }
  func.func @transform_1(%arg0: i32) -> (i32, i32, i32) {
    %c0_i32 = arith.constant 0 : i32
    %c0_i32_0 = arith.constant 0 : i32
    %c0_i32_1 = arith.constant 0 : i32
    %c0_i32_2 = arith.constant 0 : i32
    return %c0_i32, %c0_i32_0, %c0_i32_1 : i32, i32, i32
  }
  func.func @transform_2(%arg0: i32) -> (i32, i32) {
    %c0_i32 = arith.constant 0 : i32
    %c0_i32_0 = arith.constant 0 : i32
    return %arg0, %c0_i32 : i32, i32
  }
}

</mosaic_0001>

<bundles_post_ra>
// kernel: tpu_custom_call.1
= control target key start
LH: loop header
LB: loop body
LE: loop exit
PB: predicated region body
PF: predicated region fallthrough
CT: control target
= control target key end

     0   :  { %7 = vsyncpa [#allocation4], 0  ;;  %s3362_s0 = inlined_call_operand.hbm [shape: f32[16,16,256], index: 0, kind: input, shape index: {}]   ;;  %s3363_s1 = inlined_call_operand.vmem [shape: f32[1,16,1], index: 1, kind: input, shape index: {}]   ;;  %s3364_s2 = inlined_call_operand.hbm [shape: f32[16,16], index: 2, kind: output, shape index: {}]  }
   0x1   :  { %9 = vsyncpa [#allocation4 + $0x1], 0 }
   0x2   :  { %10 = vsyncpa [#allocation5], 0 }
   0x3   :  { %12 = vsyncpa [#allocation5 + $0x1], 0  ;;  %s2167_s9 = smov 0   ;;  %s2169_s10 = smov 0  }
   0x4   :  { %s2171_s11 = smov 0   ;;  %s2173_s12 = smov 0  }
   0x5 LB: > { %s2188_s13 = sadd.s32 4294967295, %s2145_s12   ;;  %s1759_s14 = sadd.s32 4294967294, %s2145_s12   ;;  %s2145_s12 = sphi %s2173_s12, %s3507_s12   ;;  %s2141_s11 = sphi %s2171_s11, %s3506_s11   ;;  %s2137_s10 = sphi %s2169_s10, %s3505_s10   ;;  %s2133_s9 = sphi %s2167_s9, %s3504_s9  }
   0x6   : > { %s2192_s15 = sadd.s32 1, %s2145_s12   ;;  %s25_s16 = sadd.s32 1, %s2141_s11 }
   0x7   : > { %s22_s17 = ssub.s32 %s2145_s12, %s2192_s15  ;;  %p32_p0 = scmp.ne.s32.totalorder %s2141_s11, %s2137_s10 }
   0x8   : > { %p23_p1 = scmp.eq.s32.totalorder %s22_s17, 0  ;;  %p33_p2 = scmp.eq.s32.totalorder %s2145_s12, 0 }
   0x9   : > { %p38_p3 = scmp.ne.s32.totalorder %s2137_s10, %s2133_s9  ;;  %p39_p4 = scmp.eq.s32.totalorder %s2188_s13, 0 }
   0xa   : > { %s2204_s18 = scalar_select %p23_p1, %s2141_s11, %s25_s16  }
   0xb   : > { %p2206_p5 = por %p33_p2, %p32_p0  ;;  %p2210_p6 = por %p39_p4, %p38_p3 }
   0xc   : > { %p83_p7 = scmp.eq.s32.totalorder %s2188_s13, 1  ;;  %p89_p8 = scmp.eq.s32.totalorder %s1759_s14, 1 }
   0xd   : > { %p1787_p10 = scmp.lt.s32.totalorder %s2145_s12, 2  ;;  %s112_s23 = sand.u32 1, %s2141_s11  }
   0xe   : > { %p2217_p11 = por %p83_p7, %p32_p0  ;;  %p2221_p12 = por %p89_p8, %p38_p3 }
   0xf   : > { %s1774_s24 = sshll.u32 %s2145_s12, 12  ;;  %s1762_s25 = sshll.u32 %s112_s23, 8 }
  0x10   : > { %s3402_s21 = scalar_select %p2217_p11, 1, 0 }
  0x11   : > { %s3403_s22 = scalar_select %p2221_p12, 1, 0 }
  0x12   : > { %s2230_s28 = scalar_lea.hbm %s3362_s0, %s1774_s24  ;;  %s116_s29 = scalar_lea.vmem [#allocation3], %s1762_s25 }
  0x13   : > { %s124_s30 = sshll.u32 %s116_s29, 4  ;;  %p2234_p13 = pnand %p1787_p10, %p2206_p5  ;;  %s2238_s30 = int_to_ptr.vmem [resolvable:$true] %s124_s30 }
  0x14   : > { %s2240_s4 = scalar_lea.sflag [#allocation4], %s112_s23  ;;  %s2049_s5 = scalar_lea.hbm %s2230_s28, 4096 }
  0x15   : > { %p2050_p0 = scmp.ne.s32.totalorder %s2230_s28, %s2049_s5  ;;  %p2051_p1 = pneg %p2234_p13 }
  0x16   : > { %s2054_s8 = scalar_lea.hbm %s3362_s0, 8192  ;;  %p2055_p4 = scmp.lt.u32.totalorder %s2230_s28, %s3362_s0 }
  0x17   : > { %p2052_p2 = pnand %p2051_p1, %p2050_p0  ;;  %p2056_p5 = scmp.lt.u32.totalorder %s2054_s8, %s2049_s5 }
  0x18   : > { %p2058_p8 = scmp.lt.u32.totalorder %s2049_s5, %s2230_s28 }
  0x19   : > { %p2053_p3 = pneg %p2052_p2  ;;  %p2057_p7 = por %p2056_p5, %p2055_p4 }
  0x1b   : > { %p2059_p10 = por %p2058_p8, %p2057_p7 }
  0x1d   : > { %p2060_p9 = pnand %p2059_p10, %p2053_p3 }
  0x1f   : > { %2063 = shalt.err (!%p2060_p9)
}
  0x20   : > { %s2064_s17 = scalar_lea.vmem %s2238_s30, 4096  ;;  %s2147_s19 = smov [#allocation3]  }
  0x21   : > { %p2065_p0 = scmp.ne.s32.totalorder %s2238_s30, %s2064_s17  ;;  %s2069_s23 = sshll.u32 %s2147_s19, 4  ;;  %s2070_s23 = int_to_ptr.vmem [resolvable:$false] %s2069_s23 }
  0x22   : > { %s2071_s24 = scalar_lea.vmem %s2070_s23, 8192  ;;  %p2072_p11 = scmp.lt.s32.totalorder %s2238_s30, %s2070_s23 }
  0x23   : > { %p2067_p2 = pnand %p2065_p0, %p2051_p1  ;;  %p2073_p4 = scmp.lt.s32.totalorder %s2071_s24, %s2064_s17 }
  0x25   : > { %p2068_p12 = pneg %p2067_p2  ;;  %p2074_p5 = por %p2073_p4, %p2072_p11 }
  0x27   : > { %p2075_p7 = pnand %p2074_p5, %p2068_p12 }
  0x29   : > { %2078 = shalt.err (!%p2075_p7)
}
  0x2a   : > { %s2148_s25 = smov 256   ;;  %s2149_s26 = smov 16  }
  0x2b   : > { %1782 = dma.hbm_to_vmem [thread:$0]  (!%p2234_p13), %s2230_s28, 4096, %s2238_s30, %s2240_s4, %s2148_s25, %s2148_s25, %s2149_s26  }
  0x2c   : > { %p1766_p9 = scmp.ge.s32.totalorder %s2145_s12, 1  ;;  %p132_p1 = scmp.lt.s32.totalorder %s2145_s12, 3 }
  0x2e   : > { %p133_p3 = pnand %p1766_p9, %p132_p1 }
  0x30   : > { %136 = sbr.rel (%p133_p3) target bundleno = 727 (0x2d7), region = 28 }
  0x37   : > { %s2271_s27 = sand.u32 1, %s2137_s10  }
  0x38   : > { %s1767_s29 = sshll.u32 %s2271_s27, 8  ;;  %s139_s5 = scalar_lea.sflag [#allocation4], %s2271_s27 }
  0x39   : > { %s2275_s6 = scalar_lea.vmem [#allocation3], %s1767_s29 }
  0x3a   : > { %2124 = dma.done.wait (%p2210_p6), %s139_s5, 4096  }
  0x3b   : > { %2126 = vsyncadd (%p2210_p6), %s139_s5, 4294963200  ;;  %v2150_v0 = vmov 0   ;;  %v196_v1 = vld [vmem:[%s3363_s1] sm:$0xff]  ;;  %v197_v2 = vld [vmem:[%s3363_s1 + $0x8] sm:$0xff]  ;;  %vm240_vm0 = vcmask 1043456   ;;  %vm828_vm1 = vcmask 1047556  }
  0x3c   : > { %1824 = vset.pattern.permute.xlu0 %v2150_v0  ;;  %v172_v3 = vld [vmem:[%s2275_s6 + $0x40] sm:$0xff]  ;;  %v173_v4 = vld [vmem:[%s2275_s6 + $0x48] sm:$0xff]  ;;  %v182_v16 = vld [vmem:[%s2275_s6 + $0x90] sm:$0xff]  ;;  %vm563_vm2 = vcmask 1041409   ;;  %vm565_vm3 = vcmask 1042434   ;;  %vm567_vm4 = vcmask 1043459  }
  0x3d   : > { %200 = vperm.xlu0 %1824, %v196_v1   ;;  %v164_v5 = vld [vmem:[%s2275_s6] sm:$0xff]  ;;  %v165_v6 = vld [vmem:[%s2275_s6 + $0x8] sm:$0xff]  ;;  %v183_v17 = vld [vmem:[%s2275_s6 + $0x98] sm:$0xff]  ;;  %vm569_vm5 = vcmask 1044484   ;;  %vm571_vm6 = vcmask 1045509   ;;  %vm573_vm7 = vcmask 1046534  }
  0x3e   : > { %v168_v7 = vld [vmem:[%s2275_s6 + $0x20] sm:$0xff]  ;;  %v169_v8 = vld [vmem:[%s2275_s6 + $0x28] sm:$0xff]  ;;  %vm575_vm8 = vcmask 1047559   ;;  %vm578_vm9 = vcmask 31744   ;;  %vm959_vm10 = vcmask 60448   ;;  %vm957_vm11 = vcmask 64548  }
  0x3f   : > { %v176_v9 = vld [vmem:[%s2275_s6 + $0x60] sm:$0xff]  ;;  %v177_v10 = vld [vmem:[%s2275_s6 + $0x68] sm:$0xff]  ;;  %vm1290_vm12 = vcmask 97344   ;;  %vm1670_vm13 = vcmask 126048   ;;  %vm1668_vm14 = vcmask 130148   ;;  %s1768_s20 = sshll.u32 %s2271_s27, 3 }
  0x40   : > { %s1770_s7 = sshll.u32 %s2188_s13, 7  ;;  %s162_s8 = scalar_lea.vmem [#allocation6], %s1768_s20  ;;  %vm1673_vm15 = vcmask 130048  }
  0x41   : > { %205 = vperm.xlu0 %1824, %v197_v2   ;;  %s1689_s14 = sshll.u32 %s162_s8, 4  ;;  %s3318_s19 = scalar_lea.hbm %s3364_s2, %s1770_s7  ;;  %s3320_s14 = int_to_ptr.vmem [resolvable:$true] %s1689_s14 }
  0x42   : > { %s1676_s23 = scalar_lea.sflag [#allocation5], %s2271_s27  ;;  %s2079_s24 = scalar_lea.vmem %s3320_s14, 128 }
  0x43   : > { %p2080_p6 = scmp.ne.s32.totalorder %s3320_s14, %s2079_s24  ;;  %p3501_p11 = scmp.ne.s32.totalorder %s3402_s21, 0 }
  0x44   : > { %s2151_s13 = smov [#allocation6]  }
  0x45   : > { %p2081_p12 = pnand %p2080_p6, %p3501_p11  ;;  %s2083_s25 = sshll.u32 %s2151_s13, 4  ;;  %s2084_s25 = int_to_ptr.vmem [resolvable:$false] %s2083_s25 }
  0x46   : > { %s2085_s26 = scalar_lea.vmem %s2084_s25, 256  ;;  %p2086_p8 = scmp.lt.s32.totalorder %s3320_s14, %s2084_s25 }
  0x47   : > { %p2082_p13 = pneg %p2081_p12  ;;  %p2087_p10 = scmp.lt.s32.totalorder %s2085_s26, %s2079_s24 }
  0x49   : > { %p2088_p0 = por %p2087_p10, %p2086_p8 }
  0x4b   : > { %p2089_p2 = pnand %p2088_p0, %p2082_p13 }
  0xbc   : > { %v2295_v11 = vpop.permute.xlu0 %200 }
  0xbd   : > { %v2298_v12 = vmul.f32 %v2295_v11, %v172_v3  ;;  %v2301_v13 = vmul.f32 %v2295_v11, %v173_v4  ;;  %v2304_v14 = vmul.f32 %v2295_v11, %v164_v5  ;;  %v2307_v15 = vmul.f32 %v2295_v11, %v165_v6  ;;  %v186_v3 = vld [vmem:[%s2275_s6 + $0xb0] sm:$0xff]  ;;  %v187_v4 = vld [vmem:[%s2275_s6 + $0xb8] sm:$0xff] }
  0xbe   : > { %v2312_v18 = vmul.f32 %v2295_v11, %v168_v7  ;;  %v2315_v19 = vmul.f32 %v2295_v11, %v169_v8  ;;  %v2318_v20 = vmul.f32 %v2295_v11, %v176_v9  ;;  %v2321_v21 = vmul.f32 %v2295_v11, %v177_v10 }
  0xbf   : > { %v269_v22 = vsel %vm240_vm0, %v2298_v12, 0.0  ;;  %v276_v23 = vsel %vm240_vm0, %v2301_v13, 0.0  ;;  %v241_v24 = vsel %vm240_vm0, %v2304_v14, 0.0  ;;  %v248_v25 = vsel %vm240_vm0, %v2307_v15, 0.0 }
  0xc0   : > { %v2331_v26 = vpop.permute.xlu0 %205  ;;  %v270_v27 = vrot.slane %v269_v22, 4  ;;  %v277_v28 = vrot.slane %v276_v23, 4  ;;  %v242_v29 = vrot.slane %v241_v24, 4  ;;  %v249_v30 = vrot.slane %v248_v25, 4 }
  0xc1   : > { %v2334_v31 = vmul.f32 %v2331_v26, %v182_v16  ;;  %v2337_v32 = vmul.f32 %v2331_v26, %v183_v17  ;;  %v255_v33 = vsel %vm240_vm0, %v2312_v18, 0.0  ;;  %v262_v34 = vsel %vm240_vm0, %v2315_v19, 0.0 }
  0xc2   : > { %v271_v35 = vadd.f32 %v270_v27, %v269_v22  ;;  %v278_v36 = vadd.f32 %v277_v28, %v276_v23  ;;  %v243_v37 = vadd.f32 %v242_v29, %v241_v24  ;;  %v250_v38 = vadd.f32 %v249_v30, %v248_v25 }
  0xc3   : > { %v1017_v39 = vsel %vm240_vm0, %v2334_v31, 0.0  ;;  %v1024_v40 = vsel %vm240_vm0, %v2337_v32, 0.0  ;;  %v256_v41 = vrot.slane %v255_v33, 4  ;;  %v263_v42 = vrot.slane %v262_v34, 4 }
  0xc4   : > { %v272_v43 = vrot.slane %v271_v35, 2  ;;  %v279_v44 = vrot.slane %v278_v36, 2  ;;  %v244_v45 = vrot.slane %v243_v37, 2  ;;  %v251_v46 = vrot.slane %v250_v38, 2 }
  0xc5   : > { %v1018_v47 = vrot.slane %v1017_v39, 4  ;;  %v1025_v48 = vrot.slane %v1024_v40, 4  ;;  %v257_v49 = vadd.f32 %v256_v41, %v255_v33  ;;  %v264_v50 = vadd.f32 %v263_v42, %v262_v34  ;;  %v194_v33 = vld [vmem:[%s2275_s6 + $0xf0] sm:$0xff] }
  0xc6   : > { %v273_v51 = vadd.f32 %v272_v43, %v271_v35  ;;  %v280_v52 = vadd.f32 %v279_v44, %v278_v36  ;;  %v245_v53 = vadd.f32 %v244_v45, %v243_v37  ;;  %v252_v54 = vadd.f32 %v251_v46, %v250_v38  ;;  %v195_v38 = vld [vmem:[%s2275_s6 + $0xf8] sm:$0xff] }
  0xc7   : > { %v1019_v55 = vadd.f32 %v1018_v47, %v1017_v39  ;;  %v1026_v56 = vadd.f32 %v1025_v48, %v1024_v40  ;;  %v258_v57 = vrot.slane %v257_v49, 2  ;;  %v265_v58 = vrot.slane %v264_v50, 2  ;;  %v166_v39 = vld [vmem:[%s2275_s6 + $0x10] sm:$0xff]  ;;  %v167_v48 = vld [vmem:[%s2275_s6 + $0x18] sm:$0xff] }
  0xc8   : > { %v274_v59 = vrot.slane %v273_v51, 1  ;;  %v281_v60 = vrot.slane %v280_v52, 1  ;;  %v246_v61 = vrot.slane %v245_v53, 1  ;;  %v253_v62 = vrot.slane %v252_v54, 1 }
  0xc9   : > { %v1020_v63 = vrot.slane %v1019_v55, 2  ;;  %v1027_v0 = vrot.slane %v1026_v56, 2  ;;  %v259_v1 = vadd.f32 %v258_v57, %v257_v49  ;;  %v266_v2 = vadd.f32 %v265_v58, %v264_v50 }
  0xca   : > { %v2349_v5 = vadd.f32 %v274_v59, %v273_v51  ;;  %v2351_v6 = vadd.f32 %v281_v60, %v280_v52  ;;  %v2353_v7 = vadd.f32 %v246_v61, %v245_v53  ;;  %v2355_v8 = vadd.f32 %v253_v62, %v252_v54 }
  0xcb   : > { %v1021_v9 = vadd.f32 %v1020_v63, %v1019_v55  ;;  %v1028_v10 = vadd.f32 %v1027_v0, %v1026_v56  ;;  %v260_v16 = vrot.slane %v259_v1, 1  ;;  %v267_v17 = vrot.slane %v266_v2, 1 }
  0xcc   : > { %v359_v22 = vmax.f32 %v2349_v5, %v2351_v6  ;;  %v353_v23 = vmax.f32 %v2353_v7, %v2355_v8  ;;  %v2362_v24 = vmul.f32 %v2331_v26, %v186_v3  ;;  %v2365_v25 = vmul.f32 %v2331_v26, %v187_v4 }
  0xcd   : > { %v1022_v27 = vrot.slane %v1021_v9, 1  ;;  %v1029_v28 = vrot.slane %v1028_v10, 1  ;;  %v2367_v29 = vadd.f32 %v260_v16, %v259_v1  ;;  %v2369_v30 = vadd.f32 %v267_v17, %v266_v2 }
  0xce   : > { %360 = vmax.xlane.f32.xlu0 %v359_v22  ;;  %354 = vmax.xlane.f32.xlu1 %v353_v23  ;;  %v1031_v34 = vsel %vm240_vm0, %v2362_v24, 0.0  ;;  %v1038_v35 = vsel %vm240_vm0, %v2365_v25, 0.0  ;;  %v283_v36 = vsel %vm240_vm0, %v2318_v20, 0.0  ;;  %v290_v37 = vsel %vm240_vm0, %v2321_v21, 0.0 }
  0xcf   : > { %v2382_v40 = vadd.f32 %v1022_v27, %v1021_v9  ;;  %v2384_v41 = vadd.f32 %v1029_v28, %v1028_v10  ;;  %v356_v42 = vmax.f32 %v2367_v29, %v2369_v30  ;;  %v1032_v43 = vrot.slane %v1031_v34, 4 }
  0xd0   : > { %v1039_v44 = vrot.slane %v1038_v35, 4  ;;  %v284_v45 = vrot.slane %v283_v36, 4  ;;  %v291_v46 = vrot.slane %v290_v37, 4  ;;  %v2389_v47 = vmul.f32 %v2331_v26, %v194_v33 }
  0xd1   : > { %v1085_v49 = vmax.f32 %v2382_v40, %v2384_v41  ;;  %v1033_v50 = vadd.f32 %v1032_v43, %v1031_v34  ;;  %v2395_v51 = vmul.f32 %v2331_v26, %v195_v38  ;;  %v2398_v52 = vmul.f32 %v2331_v26, %v166_v39 }
  0xd2   : > { %357 = vmax.xlane.f32.xlu1 %v356_v42  ;;  %v1040_v53 = vadd.f32 %v1039_v44, %v1038_v35  ;;  %v285_v54 = vadd.f32 %v284_v45, %v283_v36  ;;  %v292_v55 = vadd.f32 %v291_v46, %v290_v37  ;;  %v1059_v56 = vsel %vm240_vm0, %v2389_v47, 0.0 }
  0xd3   : > { %1086 = vmax.xlane.f32.xlu0 %v1085_v49  ;;  %v1034_v57 = vrot.slane %v1033_v50, 2  ;;  %v1060_v58 = vrot.slane %v1059_v56, 4  ;;  %v1066_v59 = vsel %vm240_vm0, %v2395_v51, 0.0  ;;  %v2405_v60 = vmul.f32 %v2331_v26, %v167_v48 }
  0xd4   : > { %v1041_v61 = vrot.slane %v1040_v53, 2  ;;  %v286_v62 = vrot.slane %v285_v54, 2  ;;  %v293_v63 = vrot.slane %v292_v55, 2  ;;  %v1067_v0 = vrot.slane %v1066_v59, 4 }
  0xd5   : > { %v1035_v1 = vadd.f32 %v1034_v57, %v1033_v50  ;;  %v1061_v2 = vadd.f32 %v1060_v58, %v1059_v56  ;;  %v961_v3 = vsel %vm240_vm0, %v2398_v52, 0.0  ;;  %v968_v4 = vsel %vm240_vm0, %v2405_v60, 0.0 }
  0xd6   : > { %v1042_v9 = vadd.f32 %v1041_v61, %v1040_v53  ;;  %v287_v10 = vadd.f32 %v286_v62, %v285_v54  ;;  %v294_v16 = vadd.f32 %v293_v63, %v292_v55  ;;  %v1068_v17 = vadd.f32 %v1067_v0, %v1066_v59  ;;  %v170_v54 = vld [vmem:[%s2275_s6 + $0x30] sm:$0xff]  ;;  %v171_v59 = vld [vmem:[%s2275_s6 + $0x38] sm:$0xff] }
  0xd7   : > { %v1036_v22 = vrot.slane %v1035_v1, 1  ;;  %v1062_v23 = vrot.slane %v1061_v2, 2  ;;  %v962_v27 = vrot.slane %v961_v3, 4  ;;  %v969_v28 = vrot.slane %v968_v4, 4 }
  0xd8   : > { %v1043_v33 = vrot.slane %v1042_v9, 1  ;;  %v288_v34 = vrot.slane %v287_v10, 1  ;;  %v295_v35 = vrot.slane %v294_v16, 1  ;;  %v1069_v36 = vrot.slane %v1068_v17, 2 }
  0xd9   : > { %v2411_v37 = vadd.f32 %v1036_v22, %v1035_v1  ;;  %v1063_v38 = vadd.f32 %v1062_v23, %v1061_v2  ;;  %v963_v39 = vadd.f32 %v962_v27, %v961_v3  ;;  %v970_v42 = vadd.f32 %v969_v28, %v968_v4  ;;  %v180_v1 = vld [vmem:[%s2275_s6 + $0x80] sm:$0xff] }
  0xda   : > { %v2413_v43 = vadd.f32 %v1043_v33, %v1042_v9  ;;  %v2415_v44 = vadd.f32 %v288_v34, %v287_v10  ;;  %v2417_v45 = vadd.f32 %v295_v35, %v294_v16  ;;  %v1070_v46 = vadd.f32 %v1069_v36, %v1068_v17  ;;  %v181_v17 = vld [vmem:[%s2275_s6 + $0x88] sm:$0xff] }
  0xdb   : > { %v1064_v48 = vrot.slane %v1063_v38, 1  ;;  %v964_v49 = vrot.slane %v963_v39, 2  ;;  %v971_v50 = vrot.slane %v970_v42, 2  ;;  %v596_v53 = vrot.slane %v2304_v14, 4 }
  0xdc   : > { %v1088_v55 = vmax.f32 %v2411_v37, %v2413_v43  ;;  %v362_v56 = vmax.f32 %v2415_v44, %v2417_v45  ;;  %v1071_v57 = vrot.slane %v1070_v46, 1  ;;  %v597_v58 = vrot.slane %v2307_v15, 4 }
  0xdd   : > { %v2427_v61 = vadd.f32 %v1064_v48, %v1063_v38  ;;  %v965_v62 = vadd.f32 %v964_v49, %v963_v39  ;;  %v972_v63 = vadd.f32 %v971_v50, %v970_v42  ;;  %v628_v0 = vsel %vm240_vm0, %v596_v53, 0.0 }
  0xde   : > { %1089 = vmax.xlane.f32.xlu0 %v1088_v55  ;;  %363 = vmax.xlane.f32.xlu1 %v362_v56  ;;  %v2431_v14 = vadd.f32 %v1071_v57, %v1070_v46  ;;  %v629_v2 = vrot.slane %v628_v0, 4  ;;  %v635_v3 = vsel %vm240_vm0, %v597_v58, 0.0  ;;  %v2435_v4 = vmul.f32 %v2331_v26, %v170_v54 }
  0xdf   : > { %v966_v15 = vrot.slane %v965_v62, 1  ;;  %v973_v9 = vrot.slane %v972_v63, 1  ;;  %v636_v10 = vrot.slane %v635_v3, 4  ;;  %v2438_v16 = vmul.f32 %v2331_v26, %v171_v59 }
  0xe0   : > { %v1094_v22 = vmax.f32 %v2427_v61, %v2431_v14  ;;  %v630_v23 = vadd.f32 %v629_v2, %v628_v0  ;;  %v975_v27 = vsel %vm240_vm0, %v2435_v4, 0.0  ;;  %v224_v28 = vmul.f32 %v2295_v11, %v180_v1 }
  0xe1   : > { %v2446_v33 = vadd.f32 %v966_v15, %v965_v62  ;;  %v2448_v34 = vadd.f32 %v973_v9, %v972_v63  ;;  %v637_v35 = vadd.f32 %v636_v10, %v635_v3  ;;  %v976_v36 = vrot.slane %v975_v27, 4 }
  0xe2   : > { %1095 = vmax.xlane.f32.xlu0 %v1094_v22  ;;  %v631_v38 = vrot.slane %v630_v23, 2  ;;  %v982_v39 = vsel %vm240_vm0, %v2438_v16, 0.0  ;;  %v225_v42 = vmul.f32 %v2295_v11, %v181_v17  ;;  %v604_v46 = vrot.slane %v224_v28, 4 }
  0xe3   : > { %3405 = vst [vmem:[#allocation9_spill] sm:$0xff] %v2448_v34  ;;  %v1073_v48 = vmax.f32 %v2446_v33, %v2448_v34  ;;  %v638_v49 = vrot.slane %v637_v35, 2  ;;  %v977_v50 = vadd.f32 %v976_v36, %v975_v27  ;;  %v983_v53 = vrot.slane %v982_v39, 4  ;;  %v178_v34 = vld [vmem:[%s2275_s6 + $0x70] sm:$0xff] }
  0xe4   : > { %v632_v54 = vadd.f32 %v631_v38, %v630_v23  ;;  %v605_v55 = vrot.slane %v225_v42, 4  ;;  %v684_v56 = vsel %vm240_vm0, %v604_v46, 0.0  ;;  %v297_v57 = vsel %vm240_vm0, %v224_v28, 0.0 }
  0xe5   : > { %1074 = vmax.xlane.f32.xlu1 %v1073_v48  ;;  %v639_v58 = vadd.f32 %v638_v49, %v637_v35  ;;  %v978_v59 = vrot.slane %v977_v50, 2  ;;  %v984_v62 = vadd.f32 %v983_v53, %v982_v39  ;;  %v685_v63 = vrot.slane %v684_v56, 4  ;;  %v174_v53 = vld [vmem:[%s2275_s6 + $0x50] sm:$0xff] }
  0xe6   : > { %v633_v0 = vrot.slane %v632_v54, 1  ;;  %v691_v1 = vsel %vm240_vm0, %v605_v55, 0.0  ;;  %v298_v2 = vrot.slane %v297_v57, 4  ;;  %v304_v3 = vsel %vm240_vm0, %v225_v42, 0.0 }
  0xe7   : > { %v640_v15 = vrot.slane %v639_v58, 1  ;;  %v979_v9 = vadd.f32 %v978_v59, %v977_v50  ;;  %v985_v10 = vrot.slane %v984_v62, 2  ;;  %v686_v17 = vadd.f32 %v685_v63, %v684_v56  ;;  %v175_v63 = vld [vmem:[%s2275_s6 + $0x58] sm:$0xff] }
  0xe8   : > { %v2459_v22 = vadd.f32 %v633_v0, %v632_v54  ;;  %v692_v23 = vrot.slane %v691_v1, 4  ;;  %v299_v27 = vadd.f32 %v298_v2, %v297_v57  ;;  %v305_v28 = vrot.slane %v304_v3, 4 }
  0xe9   : > { %v2461_v35 = vadd.f32 %v640_v15, %v639_v58  ;;  %v980_v36 = vrot.slane %v979_v9, 1  ;;  %v986_v38 = vadd.f32 %v985_v10, %v984_v62  ;;  %v687_v39 = vrot.slane %v686_v17, 2 }
  0xea   : > { %3406 = vst [vmem:[#allocation10_spill] sm:$0xff] %v2459_v22  ;;  %v693_v46 = vadd.f32 %v692_v23, %v691_v1  ;;  %v300_v48 = vrot.slane %v299_v27, 2  ;;  %v306_v49 = vadd.f32 %v305_v28, %v304_v3  ;;  %v600_v42 = vrot.slane %v2298_v12, 4 }
  0xeb   : > { %3407 = vst [vmem:[#allocation11_spill] sm:$0xff] %v2461_v35  ;;  %v740_v50 = vmax.f32 %v2459_v22, %v2461_v35  ;;  %v2467_v54 = vadd.f32 %v980_v36, %v979_v9  ;;  %v987_v55 = vrot.slane %v986_v38, 1  ;;  %v688_v56 = vadd.f32 %v687_v39, %v686_v17  ;;  %v192_v17 = vld [vmem:[%s2275_s6 + $0xe0] sm:$0xff] }
  0xec   : > { %v694_v57 = vrot.slane %v693_v46, 2  ;;  %v301_v58 = vadd.f32 %v300_v48, %v299_v27  ;;  %v307_v59 = vrot.slane %v306_v49, 2  ;;  %v601_v62 = vrot.slane %v2301_v13, 4  ;;  %v193_v48 = vld [vmem:[%s2275_s6 + $0xe8] sm:$0xff] }
  0xed   : > { %3408 = vst [vmem:[#allocation12_spill] sm:$0xff] %v2467_v54  ;;  %741 = vmax.xlane.f32.xlu0 %v740_v50  ;;  %v2471_v0 = vadd.f32 %v987_v55, %v986_v38  ;;  %v689_v1 = vrot.slane %v688_v56, 1  ;;  %v656_v12 = vsel %vm240_vm0, %v600_v42, 0.0  ;;  %v2475_v2 = vmul.f32 %v2331_v26, %v174_v53 }
  0xee   : > { %v695_v3 = vadd.f32 %v694_v57, %v693_v46  ;;  %v302_v15 = vrot.slane %v301_v58, 1  ;;  %v308_v9 = vadd.f32 %v307_v59, %v306_v49  ;;  %v657_v10 = vrot.slane %v656_v12, 4 }
  0xef   : > { %3409 = vst [vmem:[#allocation13_spill] sm:$0xff] %v2471_v0  ;;  %v1076_v23 = vmax.f32 %v2467_v54, %v2471_v0  ;;  %v2480_v13 = vadd.f32 %v689_v1, %v688_v56  ;;  %v663_v27 = vsel %vm240_vm0, %v601_v62, 0.0  ;;  %v2484_v28 = vmul.f32 %v2331_v26, %v175_v63 }
  0xf0   : > { %v696_v36 = vrot.slane %v695_v3, 1  ;;  %v2486_v38 = vadd.f32 %v302_v15, %v301_v58  ;;  %v309_v39 = vrot.slane %v308_v9, 1  ;;  %v658_v46 = vadd.f32 %v657_v10, %v656_v12  ;;  %v184_v12 = vld [vmem:[%s2275_s6 + $0xa0] sm:$0xff] }
  0xf1   : > { %3410 = vst [vmem:[#allocation14_spill] sm:$0xff] %v2480_v13  ;;  %1077 = vmax.xlane.f32.xlu1 %v1076_v23  ;;  %v664_v49 = vrot.slane %v663_v27, 4  ;;  %v989_v42 = vsel %vm240_vm0, %v2475_v2, 0.0  ;;  %v996_v53 = vsel %vm240_vm0, %v2484_v28, 0.0  ;;  %v2494_v50 = vmul.f32 %v2295_v11, %v192_v17 }
  0xf2   : > { %3411 = vst [vmem:[#allocation15_spill] sm:$0xff] %v2486_v38  ;;  %v2496_v55 = vadd.f32 %v696_v36, %v695_v3  ;;  %v2498_v56 = vadd.f32 %v309_v39, %v308_v9  ;;  %v659_v57 = vrot.slane %v658_v46, 2  ;;  %v990_v58 = vrot.slane %v989_v42, 4  ;;  %v185_v9 = vld [vmem:[%s2275_s6 + $0xa8] sm:$0xff] }
  0xf3   : > { %v665_v59 = vadd.f32 %v664_v49, %v663_v27  ;;  %v997_v62 = vrot.slane %v996_v53, 4  ;;  %v2501_v63 = vmul.f32 %v2295_v11, %v193_v48  ;;  %v610_v1 = vrot.slane %v2494_v50, 4 }
  0xf4   : > { %3412 = vst [vmem:[#allocation16_spill] sm:$0xff] %v2496_v55  ;;  %3413 = vst [vmem:[#allocation17_spill] sm:$0xff] %v2498_v56  ;;  %v752_v15 = vmax.f32 %v2480_v13, %v2496_v55  ;;  %v365_v10 = vmax.f32 %v2486_v38, %v2498_v56  ;;  %v660_v3 = vadd.f32 %v659_v57, %v658_v46 }
  0xf5   : > { %v991_v17 = vadd.f32 %v990_v58, %v989_v42  ;;  %v666_v23 = vrot.slane %v665_v59, 2  ;;  %v998_v36 = vadd.f32 %v997_v62, %v996_v53  ;;  %v611_v27 = vrot.slane %v2501_v63, 4 }
  0xf6   : > { %v726_v39 = vsel %vm240_vm0, %v610_v1, 0.0  ;;  %753 = vmax.xlane.f32.xlu0 %v752_v15  ;;  %366 = vmax.xlane.f32.xlu1 %v365_v10  ;;  %v661_v48 = vrot.slane %v660_v3, 1  ;;  %v2513_v54 = vmul.f32 %v2295_v11, %v184_v12  ;;  %v2517_v42 = vmul.f32 %v2295_v11, %v185_v9 }
  0xf7   : > { %v992_v49 = vrot.slane %v991_v17, 2  ;;  %v727_v0 = vrot.slane %v726_v39, 4  ;;  %v667_v55 = vadd.f32 %v666_v23, %v665_v59  ;;  %v999_v13 = vrot.slane %v998_v36, 2 }
  0xf8   : > { %v733_v46 = vsel %vm240_vm0, %v611_v27, 0.0  ;;  %v2519_v53 = vadd.f32 %v661_v48, %v660_v3  ;;  %v311_v10 = vsel %vm240_vm0, %v2513_v54, 0.0  ;;  %v318_v12 = vsel %vm240_vm0, %v2517_v42, 0.0 }
  0xf9   : > { %v993_v57 = vadd.f32 %v992_v49, %v991_v17  ;;  %v728_v58 = vadd.f32 %v727_v0, %v726_v39  ;;  %v734_v62 = vrot.slane %v733_v46, 4  ;;  %v668_v1 = vrot.slane %v667_v55, 1 }
  0xfa   : > { %3414 = vst [vmem:[#allocation18_spill] sm:$0xff] %v2519_v53  ;;  %v1000_v15 = vadd.f32 %v999_v13, %v998_v36  ;;  %v312_v27 = vrot.slane %v311_v10, 4  ;;  %v319_v17 = vrot.slane %v318_v12, 4  ;;  %v1308_v0 = vrot.slane %v2398_v52, 4  ;;  %v179_v52 = vld [vmem:[%s2275_s6 + $0x78] sm:$0xff] }
  0xfb   : > { %v994_v59 = vrot.slane %v993_v57, 1  ;;  %v729_v23 = vrot.slane %v728_v58, 2  ;;  %v735_v56 = vadd.f32 %v734_v62, %v733_v46  ;;  %v2525_v38 = vadd.f32 %v668_v1, %v667_v55 }
  0xfc   : > { %v1001_v3 = vrot.slane %v1000_v15, 1  ;;  %v313_v39 = vadd.f32 %v312_v27, %v311_v10  ;;  %v320_v46 = vadd.f32 %v319_v17, %v318_v12  ;;  %v1309_v55 = vrot.slane %v2405_v60, 4 }
  0xfd   : > { %3415 = vst [vmem:[#allocation19_spill] sm:$0xff] %v2525_v38  ;;  %v2528_v9 = vadd.f32 %v994_v59, %v993_v57  ;;  %v730_v13 = vadd.f32 %v729_v23, %v728_v58  ;;  %v736_v36 = vrot.slane %v735_v56, 2  ;;  %v746_v48 = vmax.f32 %v2519_v53, %v2525_v38 }
  0xfe   : > { %v2532_v49 = vadd.f32 %v1001_v3, %v1000_v15  ;;  %v314_v35 = vrot.slane %v313_v39, 2  ;;  %v1340_v22 = vsel %vm240_vm0, %v1308_v0, 0.0  ;;  %v321_v58 = vrot.slane %v320_v46, 2 }
  0xff   : > { %3416 = vst [vmem:[#allocation20_spill] sm:$0xff] %v2528_v9  ;;  %v731_v62 = vrot.slane %v730_v13, 1  ;;  %v737_v1 = vadd.f32 %v736_v36, %v735_v56  ;;  %747 = vmax.xlane.f32.xlu0 %v746_v48  ;;  %v1341_v10 = vrot.slane %v1340_v22, 4  ;;  %v1347_v59 = vsel %vm240_vm0, %v1309_v55, 0.0 }
 0x100   : > { %3417 = vst [vmem:[#allocation21_spill] sm:$0xff] %v2532_v49  ;;  %v1079_v57 = vmax.f32 %v2528_v9, %v2532_v49  ;;  %v315_v60 = vadd.f32 %v314_v35, %v313_v39  ;;  %v1348_v23 = vrot.slane %v1347_v59, 4  ;;  %v322_v56 = vadd.f32 %v321_v58, %v320_v46 }
 0x101   : > { %v2541_v15 = vadd.f32 %v731_v62, %v730_v13  ;;  %v738_v12 = vrot.slane %v737_v1, 1  ;;  %v1342_v27 = vadd.f32 %v1341_v10, %v1340_v22  ;;  %v2544_v3 = vmul.f32 %v2331_v26, %v178_v34  ;;  %v188_v34 = vld [vmem:[%s2275_s6 + $0xc0] sm:$0xff] }
 0x102   : > { %1080 = vmax.xlane.f32.xlu1 %v1079_v57  ;;  %v2547_v17 = vmul.f32 %v2331_v26, %v179_v52  ;;  %v316_v36 = vrot.slane %v315_v60, 1  ;;  %v1349_v48 = vadd.f32 %v1348_v23, %v1347_v59  ;;  %v1316_v13 = vrot.slane %v2334_v31, 4  ;;  %v189_v59 = vld [vmem:[%s2275_s6 + $0xc8] sm:$0xff] }
 0x103   : > { %3418 = vst [vmem:[#allocation22_spill] sm:$0xff] %v2541_v15  ;;  %v2549_v0 = vadd.f32 %v738_v12, %v737_v1  ;;  %v323_v55 = vrot.slane %v322_v56, 1  ;;  %v1343_v62 = vrot.slane %v1342_v27, 2  ;;  %v1003_v35 = vsel %vm240_vm0, %v2544_v3, 0.0 }
 0x104   : > { %v1010_v22 = vsel %vm240_vm0, %v2547_v17, 0.0  ;;  %v2559_v46 = vadd.f32 %v316_v36, %v315_v60  ;;  %v1350_v1 = vrot.slane %v1349_v48, 2  ;;  %v1004_v52 = vrot.slane %v1003_v35, 4 }
 0x105   : > { %3419 = vst [vmem:[#allocation23_spill] sm:$0xff] %v2549_v0  ;;  %v761_v39 = vmax.f32 %v2541_v15, %v2549_v0  ;;  %v2561_v57 = vadd.f32 %v323_v55, %v322_v56  ;;  %v1344_v58 = vadd.f32 %v1343_v62, %v1342_v27  ;;  %v1011_v31 = vrot.slane %v1010_v22, 4 }
 0x106   : > { %3420 = vst [vmem:[#allocation24_spill] sm:$0xff] %v2559_v46  ;;  %v1317_v10 = vrot.slane %v2337_v32, 4  ;;  %v1351_v12 = vadd.f32 %v1350_v1, %v1349_v48  ;;  %v1005_v23 = vadd.f32 %v1004_v52, %v1003_v35  ;;  %v1396_v49 = vsel %vm240_vm0, %v1316_v13, 0.0  ;;  %v190_v1 = vld [vmem:[%s2275_s6 + $0xd0] sm:$0xff] }
 0x107   : > { %3421 = vst [vmem:[#allocation25_spill] sm:$0xff] %v2561_v57  ;;  %762 = vmax.xlane.f32.xlu0 %v761_v39  ;;  %v2567_v9 = vmul.f32 %v2295_v11, %v188_v34  ;;  %v368_v60 = vmax.f32 %v2559_v46, %v2561_v57  ;;  %v1345_v36 = vrot.slane %v1344_v58, 1  ;;  %v1012_v56 = vadd.f32 %v1011_v31, %v1010_v22 }
 0x108   : > { %v1397_v55 = vrot.slane %v1396_v49, 4  ;;  %v1352_v27 = vrot.slane %v1351_v12, 1  ;;  %v1006_v62 = vrot.slane %v1005_v23, 2  ;;  %v1403_v32 = vsel %vm240_vm0, %v1317_v10, 0.0 }
 0x109   : > { %v2573_v48 = vmul.f32 %v2295_v11, %v189_v59  ;;  %369 = vmax.xlane.f32.xlu1 %v368_v60  ;;  %v2575_v35 = vadd.f32 %v1345_v36, %v1344_v58  ;;  %v1013_v13 = vrot.slane %v1012_v56, 2  ;;  %v1404_v39 = vrot.slane %v1403_v32, 4  ;;  %v191_v60 = vld [vmem:[%s2275_s6 + $0xd8] sm:$0xff] }
 0x10a   : > { %v1398_v34 = vadd.f32 %v1397_v55, %v1396_v49  ;;  %v2578_v52 = vadd.f32 %v1352_v27, %v1351_v12  ;;  %v1007_v57 = vadd.f32 %v1006_v62, %v1005_v23  ;;  %v325_v22 = vsel %vm240_vm0, %v2567_v9, 0.0 }
 0x10b   : > { %3422 = vst [vmem:[#allocation26_spill] sm:$0xff] %v2575_v35  ;;  %v332_v31 = vsel %vm240_vm0, %v2573_v48, 0.0  ;;  %v1014_v10 = vadd.f32 %v1013_v13, %v1012_v56  ;;  %v1405_v11 = vadd.f32 %v1404_v39, %v1403_v32  ;;  %v326_v59 = vrot.slane %v325_v22, 4 }
 0x10c   : > { %3423 = vst [vmem:[#allocation27_spill] sm:$0xff] %v2578_v52  ;;  %v1399_v46 = vrot.slane %v1398_v34, 2  ;;  %v1452_v58 = vmax.f32 %v2575_v35, %v2578_v52  ;;  %v1008_v49 = vrot.slane %v1007_v57, 1  ;;  %v333_v36 = vrot.slane %v332_v31, 4 }
 0x10d   : > { %v234_v12 = vmul.f32 %v2331_v26, %v190_v1  ;;  %v1015_v55 = vrot.slane %v1014_v10, 1  ;;  %v1406_v27 = vrot.slane %v1405_v11, 2  ;;  %v327_v62 = vadd.f32 %v326_v59, %v325_v22 }
 0x10e   : > { %v1400_v23 = vadd.f32 %v1399_v46, %v1398_v34  ;;  %1453 = vmax.xlane.f32.xlu0 %v1452_v58  ;;  %v2588_v0 = vadd.f32 %v1008_v49, %v1007_v57  ;;  %v334_v15 = vadd.f32 %v333_v36, %v332_v31  ;;  %v235_v56 = vmul.f32 %v2331_v26, %v191_v60 }
 0x10f   : > { %v1320_v32 = vrot.slane %v234_v12, 4  ;;  %v2591_v13 = vadd.f32 %v1015_v55, %v1014_v10  ;;  %v1407_v38 = vadd.f32 %v1406_v27, %v1405_v11  ;;  %v328_v52 = vrot.slane %v327_v62, 2 }
 0x110   : > { %v1401_v39 = vrot.slane %v1400_v23, 1  ;;  %v335_v35 = vrot.slane %v334_v15, 2  ;;  %v1321_v53 = vrot.slane %v235_v56, 4  ;;  %v339_v46 = vsel %vm240_vm0, %v2494_v50, 0.0 }
 0x111   : > { %v1424_v1 = vsel %vm240_vm0, %v1320_v32, 0.0  ;;  %v1082_v57 = vmax.f32 %v2588_v0, %v2591_v13  ;;  %v1408_v22 = vrot.slane %v1407_v38, 1  ;;  %v329_v26 = vadd.f32 %v328_v52, %v327_v62 }
 0x112   : > { %v2598_v34 = vadd.f32 %v1401_v39, %v1400_v23  ;;  %v336_v31 = vadd.f32 %v335_v35, %v334_v15  ;;  %v1425_v10 = vrot.slane %v1424_v1, 4  ;;  %v1431_v59 = vsel %vm240_vm0, %v1321_v53, 0.0 }
 0x113   : > { %v340_v11 = vrot.slane %v339_v46, 4  ;;  %1083 = vmax.xlane.f32.xlu1 %v1082_v57  ;;  %v2601_v60 = vadd.f32 %v1408_v22, %v1407_v38  ;;  %v330_v58 = vrot.slane %v329_v26, 1  ;;  %v1432_v49 = vrot.slane %v1431_v59, 4 }
 0x114   : > { %v346_v50 = vsel %vm240_vm0, %v2501_v63, 0.0  ;;  %v337_v36 = vrot.slane %v336_v31, 1  ;;  %v1426_v55 = vadd.f32 %v1425_v10, %v1424_v1  ;;  %v1322_v53 = vrot.slane %v2389_v47, 4 }
 0x115   : > { %3424 = vst [vmem:[#allocation28_spill] sm:$0xff] %v2601_v60  ;;  %v341_v27 = vadd.f32 %v340_v11, %v339_v46  ;;  %v347_v23 = vrot.slane %v346_v50, 4  ;;  %v1464_v52 = vmax.f32 %v2598_v34, %v2601_v60  ;;  %v2607_v15 = vadd.f32 %v330_v58, %v329_v26 }
 0x116   : > { %v1433_v35 = vadd.f32 %v1432_v49, %v1431_v59  ;;  %v2610_v62 = vadd.f32 %v337_v36, %v336_v31  ;;  %v1427_v38 = vrot.slane %v1426_v55, 2  ;;  %v1323_v63 = vrot.slane %v2395_v51, 4 }
 0x117   : > { %v342_v32 = vrot.slane %v341_v27, 2  ;;  %v348_v39 = vadd.f32 %v347_v23, %v346_v50  ;;  %1465 = vmax.xlane.f32.xlu0 %v1464_v52  ;;  %v1438_v1 = vsel %vm240_vm0, %v1322_v53, 0.0  ;;  %v1045_v46 = vsel %vm240_vm0, %v234_v12, 0.0 }
 0x118   : > { %v1434_v57 = vrot.slane %v1433_v35, 2  ;;  %v371_v22 = vmax.f32 %v2607_v15, %v2610_v62  ;;  %v1428_v26 = vadd.f32 %v1427_v38, %v1426_v55  ;;  %v1439_v31 = vrot.slane %v1438_v1, 4 }
 0x119   : > { %v343_v10 = vadd.f32 %v342_v32, %v341_v27  ;;  %v349_v59 = vrot.slane %v348_v39, 2  ;;  %v1445_v11 = vsel %vm240_vm0, %v1323_v63, 0.0  ;;  %v1046_v58 = vrot.slane %v1045_v46, 4 }
 0x11a   : > { %v1435_v47 = vadd.f32 %v1434_v57, %v1433_v35  ;;  %372 = vmax.xlane.f32.xlu1 %v371_v22  ;;  %v1429_v49 = vrot.slane %v1428_v26, 1  ;;  %v1446_v51 = vrot.slane %v1445_v11, 4  ;;  %v1440_v52 = vadd.f32 %v1439_v31, %v1438_v1 }
 0x11b   : > { %v344_v50 = vrot.slane %v343_v10, 1  ;;  %v350_v36 = vadd.f32 %v349_v59, %v348_v39  ;;  %v1047_v53 = vadd.f32 %v1046_v58, %v1045_v46  ;;  %v1052_v12 = vsel %vm240_vm0, %v235_v56, 0.0 }
 0x11c   : > { %v1436_v23 = vrot.slane %v1435_v47, 1  ;;  %v2619_v60 = vadd.f32 %v1429_v49, %v1428_v26  ;;  %v1447_v35 = vadd.f32 %v1446_v51, %v1445_v11  ;;  %v1441_v32 = vrot.slane %v1440_v52, 2 }
 0x11d   : > { %v2621_v55 = vadd.f32 %v344_v50, %v343_v10  ;;  %v351_v27 = vrot.slane %v350_v36, 1  ;;  %v1048_v57 = vrot.slane %v1047_v53, 2  ;;  %v1053_v63 = vrot.slane %v1052_v12, 4 }
 0x11e   : > { %v2623_v38 = vadd.f32 %v1436_v23, %v1435_v47  ;;  %v1448_v39 = vrot.slane %v1447_v35, 2  ;;  %v598_v59 = vrot.slane %v2312_v18, 4  ;;  %v599_v1 = vrot.slane %v2315_v19, 4 }
 0x11f   : > { %v2625_v22 = vadd.f32 %v351_v27, %v350_v36  ;;  %v1442_v46 = vadd.f32 %v1441_v32, %v1440_v52  ;;  %v1049_v26 = vadd.f32 %v1048_v57, %v1047_v53  ;;  %v1054_v10 = vadd.f32 %v1053_v63, %v1052_v12 }
 0x120   : > { %v1470_v56 = vmax.f32 %v2619_v60, %v2623_v38  ;;  %v1449_v31 = vadd.f32 %v1448_v39, %v1447_v35  ;;  %v642_v11 = vsel %vm240_vm0, %v598_v59, 0.0  ;;  %v649_v58 = vsel %vm240_vm0, %v599_v1, 0.0 }
 0x121   : > { %v374_v47 = vmax.f32 %v2621_v55, %v2625_v22  ;;  %v1443_v49 = vrot.slane %v1442_v46, 1  ;;  %v1050_v50 = vrot.slane %v1049_v26, 1  ;;  %v1055_v18 = vrot.slane %v1054_v10, 2 }
 0x122   : > { %1471 = vmax.xlane.f32.xlu0 %v1470_v56  ;;  %v643_v36 = vrot.slane %v642_v11, 4  ;;  %v1450_v19 = vrot.slane %v1449_v31, 1  ;;  %v650_v51 = vrot.slane %v649_v58, 4  ;;  %v606_v23 = vrot.slane %v2513_v54, 4 }
 0x123   : > { %375 = vmax.xlane.f32.xlu1 %v374_v47  ;;  %v607_v52 = vrot.slane %v2517_v42, 4  ;;  %v2637_v53 = vadd.f32 %v1443_v49, %v1442_v46  ;;  %v2639_v12 = vadd.f32 %v1050_v50, %v1049_v26  ;;  %v1056_v27 = vadd.f32 %v1055_v18, %v1054_v10 }
 0x124   : > { %v644_v35 = vadd.f32 %v643_v36, %v642_v11  ;;  %v2641_v32 = vadd.f32 %v1450_v19, %v1449_v31  ;;  %v651_v57 = vadd.f32 %v650_v51, %v649_v58  ;;  %v698_v63 = vsel %vm240_vm0, %v606_v23, 0.0 }
 0x125   : > { %v705_v39 = vsel %vm240_vm0, %v607_v52, 0.0  ;;  %v1057_v59 = vrot.slane %v1056_v27, 1  ;;  %v699_v56 = vrot.slane %v698_v63, 4  ;;  %v608_v46 = vrot.slane %v2567_v9, 4 }
 0x126   : > { %v645_v1 = vrot.slane %v644_v35, 2  ;;  %v706_v47 = vrot.slane %v705_v39, 4  ;;  %v1473_v54 = vmax.f32 %v2637_v53, %v2641_v32  ;;  %v652_v42 = vrot.slane %v651_v57, 2 }
 0x127   : > { %v609_v26 = vrot.slane %v2573_v48, 4  ;;  %v2649_v10 = vadd.f32 %v1057_v59, %v1056_v27  ;;  %v700_v11 = vadd.f32 %v699_v56, %v698_v63  ;;  %v712_v50 = vsel %vm240_vm0, %v608_v46, 0.0 }
 0x128   : > { %v646_v31 = vadd.f32 %v645_v1, %v644_v35  ;;  %v707_v58 = vadd.f32 %v706_v47, %v705_v39  ;;  %1474 = vmax.xlane.f32.xlu0 %v1473_v54  ;;  %v653_v49 = vadd.f32 %v652_v42, %v651_v57  ;;  %v602_v36 = vrot.slane %v2318_v20, 4 }
 0x129   : > { %v719_v18 = vsel %vm240_vm0, %v609_v26, 0.0  ;;  %v1091_v19 = vmax.f32 %v2639_v12, %v2649_v10  ;;  %v701_v9 = vrot.slane %v700_v11, 2  ;;  %v713_v52 = vrot.slane %v712_v50, 4 }
 0x12a   : > { %v647_v51 = vrot.slane %v646_v31, 1  ;;  %v708_v23 = vrot.slane %v707_v58, 2  ;;  %v654_v48 = vrot.slane %v653_v49, 1  ;;  %v720_v27 = vrot.slane %v719_v18, 4 }
 0x12b   : > { %v603_v35 = vrot.slane %v2321_v21, 4  ;;  %1092 = vmax.xlane.f32.xlu1 %v1091_v19  ;;  %v702_v57 = vadd.f32 %v701_v9, %v700_v11  ;;  %v670_v59 = vsel %vm240_vm0, %v602_v36, 0.0  ;;  %v714_v20 = vadd.f32 %v713_v52, %v712_v50 }
 0x12c   : > { %v2657_v63 = vadd.f32 %v647_v51, %v646_v31  ;;  %v709_v39 = vadd.f32 %v708_v23, %v707_v58  ;;  %v2660_v1 = vadd.f32 %v654_v48, %v653_v49  ;;  %v721_v56 = vadd.f32 %v720_v27, %v719_v18 }
 0x12d   : > { %v671_v47 = vrot.slane %v670_v59, 4  ;;  %v703_v54 = vrot.slane %v702_v57, 1  ;;  %v677_v46 = vsel %vm240_vm0, %v603_v35, 0.0  ;;  %v1310_v26 = vrot.slane %v2435_v4, 4 }
 0x12e   : > { %v710_v42 = vrot.slane %v709_v39, 1  ;;  %v743_v21 = vmax.f32 %v2657_v63, %v2660_v1  ;;  %v715_v31 = vrot.slane %v714_v20, 2  ;;  %v722_v19 = vrot.slane %v721_v56, 2 }
 0x12f   : > { %v672_v11 = vadd.f32 %v671_v47, %v670_v59  ;;  %v2666_v58 = vadd.f32 %v703_v54, %v702_v57  ;;  %v678_v49 = vrot.slane %v677_v46, 4  ;;  %v1311_v50 = vrot.slane %v2438_v16, 4 }
 0x130   : > { %v2668_v36 = vadd.f32 %v710_v42, %v709_v39  ;;  %744 = vmax.xlane.f32.xlu1 %v743_v21  ;;  %v716_v18 = vadd.f32 %v715_v31, %v714_v20  ;;  %v723_v51 = vadd.f32 %v722_v19, %v721_v56  ;;  %v1354_v23 = vsel %vm240_vm0, %v1310_v26, 0.0 }
 0x131   : > { %v673_v9 = vrot.slane %v672_v11, 2  ;;  %v679_v48 = vadd.f32 %v678_v49, %v677_v46  ;;  %v1355_v52 = vrot.slane %v1354_v23, 4  ;;  %v1361_v27 = vsel %vm240_vm0, %v1311_v50, 0.0 }
 0x132   : > { %v755_v4 = vmax.f32 %v2666_v58, %v2668_v36  ;;  %v717_v35 = vrot.slane %v716_v18, 1  ;;  %v724_v57 = vrot.slane %v723_v51, 1  ;;  %v1362_v59 = vrot.slane %v1361_v27, 4 }
 0x133   : > { %v674_v39 = vadd.f32 %v673_v9, %v672_v11  ;;  %v680_v47 = vrot.slane %v679_v48, 2  ;;  %v1356_v54 = vadd.f32 %v1355_v52, %v1354_v23  ;;  %v1318_v16 = vrot.slane %v2362_v24, 4 }
 0x134   : > { %v1319_v20 = vrot.slane %v2365_v25, 4  ;;  %756 = vmax.xlane.f32.xlu1 %v755_v4  ;;  %v2677_v56 = vadd.f32 %v717_v35, %v716_v18  ;;  %v2679_v42 = vadd.f32 %v724_v57, %v723_v51  ;;  %v1363_v46 = vadd.f32 %v1362_v59, %v1361_v27 }
 0x135   : > { %v675_v26 = vrot.slane %v674_v39, 1  ;;  %v681_v21 = vadd.f32 %v680_v47, %v679_v48  ;;  %v1357_v31 = vrot.slane %v1356_v54, 2  ;;  %v1410_v19 = vsel %vm240_vm0, %v1318_v16, 0.0 }
 0x136   : > { %v1417_v11 = vsel %vm240_vm0, %v1319_v20, 0.0  ;;  %v758_v49 = vmax.f32 %v2677_v56, %v2679_v42  ;;  %v1364_v24 = vrot.slane %v1363_v46, 2  ;;  %v1411_v25 = vrot.slane %v1410_v19, 4 }
 0x137   : > { %v2685_v50 = vadd.f32 %v675_v26, %v674_v39  ;;  %v682_v9 = vrot.slane %v681_v21, 1  ;;  %v1358_v18 = vadd.f32 %v1357_v31, %v1356_v54  ;;  %v1418_v23 = vrot.slane %v1417_v11, 4 }
 0x138   : > { %v1312_v51 = vrot.slane %v2475_v2, 4  ;;  %759 = vmax.xlane.f32.xlu1 %v758_v49  ;;  %v1365_v4 = vadd.f32 %v1364_v24, %v1363_v46  ;;  %v1412_v48 = vadd.f32 %v1411_v25, %v1410_v19  ;;  %v1313_v52 = vrot.slane %v2484_v28, 4 }
 0x139   : > { %v1314_v27 = vrot.slane %v2544_v3, 4  ;;  %v2690_v35 = vadd.f32 %v682_v9, %v681_v21  ;;  %v1359_v57 = vrot.slane %v1358_v18, 1  ;;  %v1419_v59 = vadd.f32 %v1418_v23, %v1417_v11 }
 0x13a   : > { %v1368_v39 = vsel %vm240_vm0, %v1312_v51, 0.0  ;;  %v1366_v47 = vrot.slane %v1365_v4, 1  ;;  %v1413_v16 = vrot.slane %v1412_v48, 2  ;;  %v1375_v54 = vsel %vm240_vm0, %v1313_v52, 0.0 }
 0x13b   : > { %v1369_v20 = vrot.slane %v1368_v39, 4  ;;  %v749_v2 = vmax.f32 %v2685_v50, %v2690_v35  ;;  %v2696_v26 = vadd.f32 %v1359_v57, %v1358_v18  ;;  %v1420_v46 = vrot.slane %v1419_v59, 2 }
 0x13c   : > { %v1376_v28 = vrot.slane %v1375_v54, 4  ;;  %v2698_v31 = vadd.f32 %v1366_v47, %v1365_v4  ;;  %v1414_v3 = vadd.f32 %v1413_v16, %v1412_v48  ;;  %v1315_v19 = vrot.slane %v2547_v17, 4 }
 0x13d   : > { %v1370_v21 = vadd.f32 %v1369_v20, %v1368_v39  ;;  %750 = vmax.xlane.f32.xlu1 %v749_v2  ;;  %v1421_v11 = vadd.f32 %v1420_v46, %v1419_v59  ;;  %v1382_v24 = vsel %vm240_vm0, %v1314_v27, 0.0 }
 0x13e   : > { %v1377_v49 = vadd.f32 %v1376_v28, %v1375_v54  ;;  %v1415_v25 = vrot.slane %v1414_v3, 1  ;;  %v1383_v23 = vrot.slane %v1382_v24, 4  ;;  %v1455_v18 = vmax.f32 %v2696_v26, %v2698_v31 }
 0x13f   : > { %v1371_v9 = vrot.slane %v1370_v21, 2  ;;  %v1422_v51 = vrot.slane %v1421_v11, 1  ;;  %v1389_v4 = vsel %vm240_vm0, %v1315_v19, 0.0 }
 0x140   : > { %v1378_v52 = vrot.slane %v1377_v49, 2  ;;  %v2705_v57 = vadd.f32 %v1415_v25, %v1414_v3  ;;  %v1384_v39 = vadd.f32 %v1383_v23, %v1382_v24  ;;  %v1390_v17 = vrot.slane %v1389_v4, 4 }
 0x141   : > { %v1372_v48 = vadd.f32 %v1371_v9, %v1370_v21  ;;  %1456 = vmax.xlane.f32.xlu1 %v1455_v18  ;;  %v2707_v59 = vadd.f32 %v1422_v51, %v1421_v11 }
 0x142   : > { %v1379_v47 = vadd.f32 %v1378_v52, %v1377_v49  ;;  %v1385_v16 = vrot.slane %v1384_v39, 2  ;;  %v1391_v20 = vadd.f32 %v1390_v17, %v1389_v4 }
 0x143   : > { %3425 = vst [vmem:[#allocation29_spill] sm:$0xff] %v2707_v59  ;;  %v1373_v27 = vrot.slane %v1372_v48, 1  ;;  %v1467_v54 = vmax.f32 %v2705_v57, %v2707_v59  ;;  %v3464_v59 = vld [vmem:[#allocation25_spill] sm:$0xff] }
 0x144   : > { %v1380_v2 = vrot.slane %v1379_v47, 1  ;;  %v1386_v28 = vadd.f32 %v1385_v16, %v1384_v39  ;;  %v1392_v19 = vrot.slane %v1391_v20, 2 }
 0x145   : > { %v2711_v46 = vadd.f32 %v1373_v27, %v1372_v48  ;;  %1468 = vmax.xlane.f32.xlu1 %v1467_v54 }
 0x146   : > { %v2713_v3 = vadd.f32 %v1380_v2, %v1379_v47  ;;  %v1387_v21 = vrot.slane %v1386_v28, 1  ;;  %v1393_v24 = vadd.f32 %v1392_v19, %v1391_v20 }
 0x147   : > { %3426 = vst [vmem:[#allocation30_spill] sm:$0xff] %v2711_v46 }
 0x148   : > { %3427 = vst [vmem:[#allocation31_spill] sm:$0xff] %v2713_v3  ;;  %v1458_v11 = vmax.f32 %v2711_v46, %v2713_v3  ;;  %v2717_v49 = vadd.f32 %v1387_v21, %v1386_v28  ;;  %v1394_v25 = vrot.slane %v1393_v24, 1 }
 0x14a   : > { %3428 = vst [vmem:[#allocation32_spill] sm:$0xff] %v2717_v49  ;;  %1459 = vmax.xlane.f32.xlu1 %v1458_v11  ;;  %v2719_v9 = vadd.f32 %v1394_v25, %v1393_v24 }
 0x14c   : > { %3429 = vst [vmem:[#allocation33_spill] sm:$0xff] %v2719_v9  ;;  %v1461_v23 = vmax.f32 %v2717_v49, %v2719_v9  ;;  %v3450_v49 = vld [vmem:[#allocation17_spill] sm:$0xff] }
 0x14e   : > { %1462 = vmax.xlane.f32.xlu1 %v1461_v23 }
 0x15b   : > { %v361_v18 = vpop.xlane.xlu0 %360  ;;  %v355_v51 = vpop.xlane.xlu1 %354 }
 0x15c   : > { %v381_v52 = vsub.f32 %v2349_v5, %v361_v18  ;;  %v382_v4 = vsub.f32 %v2351_v6, %v361_v18  ;;  %v377_v48 = vsub.f32 %v2353_v7, %v355_v51  ;;  %v378_v39 = vsub.f32 %v2355_v8, %v355_v51 }
 0x15e   : > { %v401_v17 = vmul.f32 1.442695, %v381_v52  ;;  %v403_v47 = vmul.f32 1.442695, %v382_v4  ;;  %v393_v27 = vmul.f32 1.442695, %v377_v48 }
 0x15f   : > { %v395_v16 = vmul.f32 1.442695, %v378_v39  ;;  %v358_v20 = vpop.xlane.xlu1 %357  ;;  %v2740_v39 = vld [vmem:[%s2275_s6] sm:$0xff] }
 0x160   : > { %1825 = vpow2.f32 %v401_v17  ;;  %v1087_v54 = vpop.xlane.xlu0 %1086  ;;  %v379_v2 = vsub.f32 %v2367_v29, %v358_v20  ;;  %v380_v28 = vsub.f32 %v2369_v30, %v358_v20 }
 0x161   : > { %1827 = vpow2.f32 %v403_v47  ;;  %v1105_v5 = vsub.f32 %v2382_v40, %v1087_v54  ;;  %v1106_v6 = vsub.f32 %v2384_v41, %v1087_v54  ;;  %v2732_v40 = vld [vmem:[%s2275_s6 + $0x40] sm:$0xff]  ;;  %v2744_v47 = vld [vmem:[%s2275_s6 + $0x48] sm:$0xff] }
 0x162   : > { %1829 = vpow2.f32 %v393_v27  ;;  %v397_v7 = vmul.f32 1.442695, %v379_v2  ;;  %v399_v19 = vmul.f32 1.442695, %v380_v28  ;;  %v2748_v28 = vld [vmem:[%s2275_s6 + $0x20] sm:$0xff] }
 0x163   : > { %1831 = vpow2.f32 %v395_v16  ;;  %v1129_v8 = vmul.f32 1.442695, %v1105_v5  ;;  %v1131_v21 = vmul.f32 1.442695, %v1106_v6  ;;  %3430 = vst [vmem:[#allocation34_spill] sm:$0xff] %v2748_v28  ;;  %v2752_v5 = vld [vmem:[%s2275_s6 + $0x8] sm:$0xff] }
 0x164   : > { %1833 = vpow2.f32 %v397_v7 }
 0x165   : > { %1835 = vpow2.f32 %v1129_v8 }
 0x166   : > { %1837 = vpow2.f32 %v399_v19 }
 0x167   : > { %1839 = vpow2.f32 %v1131_v21 }
 0x16a   : > { %v1826_v29 = vpop.eup %1825 }
 0x16b   : > { %v1828_v30 = vpop.eup %1827  ;;  %v1090_v24 = vpop.xlane.xlu0 %1089  ;;  %v429_v41 = vmul.f32 %v2732_v40, %v1826_v29 }
 0x16c   : > { %v364_v11 = vpop.xlane.xlu1 %363  ;;  %v1830_v25 = vpop.eup %1829  ;;  %v1107_v23 = vsub.f32 %v2411_v37, %v1090_v24  ;;  %v1108_v18 = vsub.f32 %v2413_v43, %v1090_v24  ;;  %v487_v48 = vadd.f32 %v1828_v30, %v1826_v29  ;;  %v430_v27 = vmul.f32 %v2744_v47, %v1828_v30 }
 0x16d   : > { %v383_v51 = vsub.f32 %v2415_v44, %v364_v11  ;;  %v384_v52 = vsub.f32 %v2417_v45, %v364_v11  ;;  %v1832_v4 = vpop.eup %1831  ;;  %v425_v17 = vmul.f32 %v2740_v39, %v1830_v25  ;;  %v451_v7 = vsel %vm240_vm0, %v429_v41, 0.0 }
 0x16e   : > { %v1834_v16 = vpop.eup %1833  ;;  %v1133_v37 = vmul.f32 1.442695, %v1107_v23  ;;  %v1135_v20 = vmul.f32 1.442695, %v1108_v18  ;;  %v481_v54 = vadd.f32 %v1832_v4, %v1830_v25  ;;  %v426_v6 = vmul.f32 %v2752_v5, %v1832_v4 }
 0x16f   : > { %v405_v43 = vmul.f32 1.442695, %v383_v51  ;;  %v407_v2 = vmul.f32 1.442695, %v384_v52  ;;  %v1096_v44 = vpop.xlane.xlu0 %1095  ;;  %v427_v45 = vmul.f32 %v2748_v28, %v1834_v16  ;;  %v2756_v8 = vpop.eup %1835  ;;  %v441_v29 = vsel %vm240_vm0, %v425_v17, 0.0  ;;  %v3431_v52 = vld [vmem:[#allocation9_spill] sm:$0xff] }
 0x170   : > { %1841 = vpow2.f32 %v1133_v37  ;;  %v1111_v19 = vsub.f32 %v2427_v61, %v1096_v44  ;;  %v1112_v21 = vsub.f32 %v2431_v14, %v1096_v44  ;;  %482 = vadd.xlane.f32.xlu1 %v481_v54  ;;  %v1838_v30 = vpop.eup %1837  ;;  %v442_v11 = vsel %vm240_vm0, %v426_v6, 0.0  ;;  %v2769_v17 = vld [vmem:[%s2275_s6 + $0x28] sm:$0xff] }
 0x171   : > { %1843 = vpow2.f32 %v1135_v20  ;;  %v446_v24 = vsel %vm240_vm0, %v427_v45, 0.0  ;;  %v452_v25 = vsel %vm240_vm0, %v430_v27, 0.0  ;;  %v484_v61 = vadd.f32 %v1838_v30, %v1834_v16  ;;  %v2764_v51 = vpop.eup %1839  ;;  %3432 = vst [vmem:[#allocation9_spill] sm:$0xff] %v2769_v17  ;;  %v2777_v16 = vld [vmem:[%s2275_s6 + $0x90] sm:$0xff] }
 0x172   : > { %1845 = vpow2.f32 %v405_v43  ;;  %v1141_v41 = vmul.f32 1.442695, %v1111_v19  ;;  %v1143_v23 = vmul.f32 1.442695, %v1112_v21  ;;  %v1075_v18 = vpop.xlane.xlu1 %1074  ;;  %v428_v37 = vmul.f32 %v2769_v17, %v1838_v30  ;;  %v3444_v17 = vld [vmem:[#allocation13_spill] sm:$0xff] }
 0x173   : > { %1847 = vpow2.f32 %v407_v2  ;;  %v1097_v14 = vsub.f32 %v2446_v33, %v1075_v18  ;;  %v1098_v4 = vsub.f32 %v3431_v52, %v1075_v18  ;;  %485 = vadd.xlane.f32.xlu0 %v484_v61  ;;  %v2772_v27 = vadd.f32 %v442_v11, %v441_v29 }
 0x174   : > { %1849 = vpow2.f32 %v1141_v41  ;;  %488 = vadd.xlane.f32.xlu1 %v487_v48  ;;  %v2774_v20 = vadd.f32 %v452_v25, %v451_v7  ;;  %v1153_v43 = vmul.f32 %v2777_v16, %v2756_v8  ;;  %v447_v2 = vsel %vm240_vm0, %v428_v37, 0.0  ;;  %v2785_v48 = vld [vmem:[%s2275_s6 + $0x98] sm:$0xff]  ;;  %v3438_v25 = vld [vmem:[#allocation11_spill] sm:$0xff] }
 0x175   : > { %3433 = vst [vmem:[#allocation35_spill] sm:$0xff] %v2772_v27  ;;  %1851 = vpow2.f32 %v1143_v23  ;;  %v1113_v33 = vmul.f32 1.442695, %v1097_v14  ;;  %v1115_v54 = vmul.f32 1.442695, %v1098_v4  ;;  %v2782_v44 = vadd.f32 %v447_v2, %v446_v24  ;;  %v3437_v24 = vld [vmem:[#allocation10_spill] sm:$0xff] }
 0x176   : > { %3434 = vst [vmem:[#allocation36_spill] sm:$0xff] %v2774_v20  ;;  %v1154_v45 = vmul.f32 %v2785_v48, %v2764_v51  ;;  %v1181_v6 = vsel %vm240_vm0, %v1153_v43, 0.0  ;;  %v2800_v23 = vld [vmem:[%s2275_s6 + $0xb0] sm:$0xff]  ;;  %v2805_v14 = vld [vmem:[%s2275_s6 + $0xb8] sm:$0xff] }
 0x177   : > { %3435 = vst [vmem:[#allocation37_spill] sm:$0xff] %v2782_v44  ;;  %1853 = vpow2.f32 %v1113_v33  ;;  %3439 = vst [vmem:[#allocation10_spill] sm:$0xff] %v2800_v23  ;;  %v2810_v33 = vld [vmem:[%s2275_s6 + $0x60] sm:$0xff] }
 0x178   : > { %1855 = vpow2.f32 %v1115_v54  ;;  %v1182_v7 = vsel %vm240_vm0, %v1154_v45, 0.0  ;;  %3440 = vst [vmem:[#allocation11_spill] sm:$0xff] %v2805_v14  ;;  %3441 = vst [vmem:[#allocation39_spill] sm:$0xff] %v2810_v33 }
 0x179   : > { %v2791_v19 = vadd.f32 %v1182_v7, %v1181_v6 }
 0x17a   : > { %v2793_v21 = vpop.eup %1841  ;;  %v742_v29 = vpop.xlane.xlu0 %741 }
 0x17b   : > { %3436 = vst [vmem:[#allocation38_spill] sm:$0xff] %v2791_v19  ;;  %v2795_v30 = vpop.eup %1843  ;;  %v764_v11 = vsub.f32 %v3437_v24, %v742_v29  ;;  %v765_v41 = vsub.f32 %v3438_v25, %v742_v29  ;;  %v1155_v18 = vmul.f32 %v2800_v23, %v2793_v21  ;;  %v2817_v29 = vld [vmem:[%s2275_s6 + $0x68] sm:$0xff]  ;;  %v3449_v23 = vld [vmem:[#allocation15_spill] sm:$0xff] }
 0x17c   : > { %v1846_v61 = vpop.eup %1845  ;;  %v1156_v52 = vmul.f32 %v2805_v14, %v2795_v30  ;;  %3442 = vst [vmem:[#allocation40_spill] sm:$0xff] %v2817_v29 }
 0x17d   : > { %v1848_v4 = vpop.eup %1847  ;;  %v780_v37 = vmul.f32 1.442695, %v764_v11  ;;  %v782_v43 = vmul.f32 1.442695, %v765_v41  ;;  %v431_v54 = vmul.f32 %v2810_v33, %v1846_v61  ;;  %v1186_v2 = vsel %vm240_vm0, %v1155_v18, 0.0  ;;  %v3443_v11 = vld [vmem:[#allocation12_spill] sm:$0xff] }
 0x17e   : > { %v2814_v45 = vpop.eup %1849  ;;  %v1078_v6 = vpop.xlane.xlu1 %1077  ;;  %v490_v7 = vadd.f32 %v1848_v4, %v1846_v61  ;;  %v432_v24 = vmul.f32 %v2817_v29, %v1848_v4  ;;  %v1187_v25 = vsel %vm240_vm0, %v1156_v52, 0.0 }
 0x17f   : > { %v2821_v19 = vpop.eup %1851  ;;  %1857 = vpow2.f32 %v780_v37  ;;  %v1099_v41 = vsub.f32 %v3443_v11, %v1078_v6  ;;  %v1100_v18 = vsub.f32 %v3444_v17, %v1078_v6  ;;  %v456_v28 = vsel %vm240_vm0, %v431_v54, 0.0  ;;  %v2832_v37 = vld [vmem:[%s2275_s6 + $0xf0] sm:$0xff]  ;;  %v2841_v54 = vld [vmem:[%s2275_s6 + $0xf8] sm:$0xff] }
 0x180   : > { %1859 = vpow2.f32 %v782_v43  ;;  %491 = vadd.xlane.f32.xlu0 %v490_v7  ;;  %v457_v61 = vsel %vm240_vm0, %v432_v24, 0.0  ;;  %v2827_v20 = vadd.f32 %v1187_v25, %v1186_v2  ;;  %v1159_v11 = vmul.f32 %v2832_v37, %v2814_v45  ;;  %v2837_v6 = vld [vmem:[%s2275_s6 + $0x10] sm:$0xff]  ;;  %v2846_v25 = vld [vmem:[%s2275_s6 + $0x18] sm:$0xff] }
 0x181   : > { %v1854_v4 = vpop.eup %1853  ;;  %v1117_v52 = vmul.f32 1.442695, %v1099_v41  ;;  %v1119_v27 = vmul.f32 1.442695, %v1100_v18  ;;  %v2829_v14 = vadd.f32 %v457_v61, %v456_v28  ;;  %v1160_v2 = vmul.f32 %v2841_v54, %v2821_v19  ;;  %v3447_v61 = vld [vmem:[#allocation14_spill] sm:$0xff] }
 0x182   : > { %3445 = vst [vmem:[#allocation12_spill] sm:$0xff] %v2827_v20  ;;  %v1856_v17 = vpop.eup %1855  ;;  %v1145_v43 = vmul.f32 %v2837_v6, %v1854_v4  ;;  %v1196_v18 = vsel %vm240_vm0, %v1159_v11, 0.0 }
 0x183   : > { %3446 = vst [vmem:[#allocation13_spill] sm:$0xff] %v2829_v14  ;;  %1861 = vpow2.f32 %v1117_v52  ;;  %v754_v7 = vpop.xlane.xlu0 %753  ;;  %v367_v24 = vpop.xlane.xlu1 %366  ;;  %v1201_v28 = vadd.f32 %v1856_v17, %v1854_v4  ;;  %v1146_v41 = vmul.f32 %v2846_v25, %v1856_v17  ;;  %v3448_v14 = vld [vmem:[#allocation16_spill] sm:$0xff]  ;;  %v1197_v33 = vsel %vm240_vm0, %v1160_v2, 0.0 }
 0x184   : > { %1863 = vpow2.f32 %v1119_v27  ;;  %v772_v20 = vsub.f32 %v3447_v61, %v754_v7  ;;  %v773_v44 = vsub.f32 %v3448_v14, %v754_v7  ;;  %v385_v9 = vsub.f32 %v3449_v23, %v367_v24 }
 0x185   : > { %v386_v29 = vsub.f32 %v3450_v49, %v367_v24  ;;  %1202 = vadd.xlane.f32.xlu1 %v1201_v28  ;;  %v1161_v52 = vsel %vm240_vm0, %v1145_v43, 0.0  ;;  %v1162_v4 = vsel %vm240_vm0, %v1146_v41, 0.0  ;;  %v2859_v61 = vadd.f32 %v1197_v33, %v1196_v18  ;;  %v3453_v33 = vld [vmem:[#allocation18_spill] sm:$0xff]  ;;  %v3454_v43 = vld [vmem:[#allocation19_spill] sm:$0xff]  ;;  %v2874_v28 = vld [vmem:[%s2275_s6 + $0x30] sm:$0xff] }
 0x186   : > { %v796_v3 = vmul.f32 1.442695, %v772_v20  ;;  %v798_v17 = vmul.f32 1.442695, %v773_v44  ;;  %v409_v46 = vmul.f32 1.442695, %v385_v9  ;;  %v2857_v11 = vadd.f32 %v1162_v4, %v1161_v52 }
 0x187   : > { %v411_v27 = vmul.f32 1.442695, %v386_v29  ;;  %3452 = vst [vmem:[#allocation16_spill] sm:$0xff] %v2859_v61  ;;  %3455 = vst [vmem:[#allocation15_spill] sm:$0xff] %v2874_v28  ;;  %v3457_v52 = vld [vmem:[#allocation20_spill] sm:$0xff] }
 0x188   : > { %3451 = vst [vmem:[#allocation14_spill] sm:$0xff] %v2857_v11  ;;  %1865 = vpow2.f32 %v796_v3 }
 0x189   : > { %v2861_v14 = vpop.eup %1857  ;;  %1867 = vpow2.f32 %v798_v17  ;;  %v3458_v17 = vld [vmem:[#allocation21_spill] sm:$0xff] }
 0x18a   : > { %v2863_v49 = vpop.eup %1859  ;;  %1869 = vpow2.f32 %v409_v46  ;;  %v812_v23 = vmul.f32 %v2740_v39, %v2861_v14 }
 0x18b   : > { %1871 = vpow2.f32 %v411_v27  ;;  %v813_v9 = vmul.f32 %v2752_v5, %v2863_v49 }
 0x18c   : > { %v748_v20 = vpop.xlane.xlu0 %747  ;;  %v829_v44 = vsel %vm828_vm1, %v812_v23, 0.0 }
 0x18d   : > { %v1862_v3 = vpop.eup %1861  ;;  %v768_v29 = vsub.f32 %v3453_v33, %v748_v20  ;;  %v769_v2 = vsub.f32 %v3454_v43, %v748_v20  ;;  %v830_v7 = vsel %vm828_vm1, %v813_v9, 0.0  ;;  %v2882_v33 = vld [vmem:[%s2275_s6 + $0x38] sm:$0xff] }
 0x18e   : > { %v1864_v24 = vpop.eup %1863  ;;  %v1147_v39 = vmul.f32 %v2874_v28, %v1862_v3  ;;  %v2877_v41 = vadd.f32 %v830_v7, %v829_v44  ;;  %3459 = vst [vmem:[#allocation18_spill] sm:$0xff] %v2882_v33  ;;  %v2035_v7 = vld [vmem:[%s2275_s6 + $0x80] sm:$0xff] }
 0x18f   : > { %v1081_v46 = vpop.xlane.xlu1 %1080  ;;  %v788_v5 = vmul.f32 1.442695, %v768_v29  ;;  %v790_v18 = vmul.f32 1.442695, %v769_v2  ;;  %v1204_v23 = vadd.f32 %v1864_v24, %v1862_v3  ;;  %v1148_v9 = vmul.f32 %v2882_v33, %v1864_v24  ;;  %v3463_v33 = vld [vmem:[#allocation24_spill] sm:$0xff] }
 0x190   : > { %3456 = vst [vmem:[#allocation17_spill] sm:$0xff] %v2877_v41  ;;  %v1101_v4 = vsub.f32 %v3457_v52, %v1081_v46  ;;  %v1102_v27 = vsub.f32 %v3458_v17, %v1081_v46  ;;  %v1166_v20 = vsel %vm240_vm0, %v1147_v39, 0.0  ;;  %v3461_v39 = vld [vmem:[#allocation22_spill] sm:$0xff]  ;;  %v3462_v52 = vld [vmem:[#allocation23_spill] sm:$0xff] }
 0x191   : > { %1873 = vpow2.f32 %v788_v5  ;;  %1205 = vadd.xlane.f32.xlu0 %v1204_v23  ;;  %v1167_v44 = vsel %vm240_vm0, %v1148_v9, 0.0 }
 0x192   : > { %v1121_v43 = vmul.f32 1.442695, %v1101_v4  ;;  %v1123_v11 = vmul.f32 1.442695, %v1102_v27  ;;  %v2886_v61 = vpop.eup %1865  ;;  %1875 = vpow2.f32 %v790_v18  ;;  %v2891_v2 = vadd.f32 %v1167_v44, %v1166_v20  ;;  %v2036_v27 = vld [vmem:[%s2275_s6 + $0x88] sm:$0xff] }
 0x193   : > { %v2889_v29 = vpop.eup %1867  ;;  %v820_v24 = vmul.f32 %v2035_v7, %v2886_v61 }
 0x194   : > { %1877 = vpow2.f32 %v1121_v43  ;;  %v763_v3 = vpop.xlane.xlu0 %762  ;;  %3460 = vst [vmem:[#allocation19_spill] sm:$0xff] %v2891_v2  ;;  %v1870_v46 = vpop.eup %1869  ;;  %v821_v23 = vmul.f32 %v2036_v27, %v2889_v29 }
 0x195   : > { %1879 = vpow2.f32 %v1123_v11  ;;  %v778_v5 = vsub.f32 %v3461_v39, %v763_v3  ;;  %v779_v4 = vsub.f32 %v3462_v52, %v763_v3  ;;  %v1872_v17 = vpop.eup %1871  ;;  %v433_v18 = vmul.f32 %v2035_v7, %v1870_v46 }
 0x196   : > { %v849_v9 = vsel %vm828_vm1, %v820_v24, 0.0  ;;  %v370_v20 = vpop.xlane.xlu1 %369  ;;  %v493_v44 = vadd.f32 %v1872_v17, %v1870_v46  ;;  %v434_v2 = vmul.f32 %v2036_v27, %v1872_v17  ;;  %v850_v3 = vsel %vm828_vm1, %v821_v23, 0.0  ;;  %v3467_v17 = vld [vmem:[#allocation26_spill] sm:$0xff]  ;;  %v3468_v27 = vld [vmem:[#allocation27_spill] sm:$0xff] }
 0x197   : > { %v808_v43 = vmul.f32 1.442695, %v778_v5  ;;  %v810_v41 = vmul.f32 1.442695, %v779_v4  ;;  %v387_v28 = vsub.f32 %v3463_v33, %v370_v20  ;;  %v388_v11 = vsub.f32 %v3464_v59, %v370_v20 }
 0x198   : > { %v461_v39 = vsel %vm240_vm0, %v433_v18, 0.0  ;;  %494 = vadd.xlane.f32.xlu1 %v493_v44  ;;  %v462_v7 = vsel %vm240_vm0, %v434_v2, 0.0  ;;  %v2905_v52 = vadd.f32 %v850_v3, %v849_v9  ;;  %v2920_v44 = vld [vmem:[%s2275_s6 + $0x50] sm:$0xff] }
 0x199   : > { %1881 = vpow2.f32 %v808_v43  ;;  %v413_v24 = vmul.f32 1.442695, %v387_v28  ;;  %v415_v5 = vmul.f32 1.442695, %v388_v11  ;;  %v2907_v46 = vadd.f32 %v462_v7, %v461_v39  ;;  %v2925_v7 = vld [vmem:[%s2275_s6 + $0x58] sm:$0xff] }
 0x19a   : > { %3465 = vst [vmem:[#allocation20_spill] sm:$0xff] %v2905_v52  ;;  %1883 = vpow2.f32 %v810_v41  ;;  %3469 = vst [vmem:[#allocation22_spill] sm:$0xff] %v2925_v7 }
 0x19b   : > { %3466 = vst [vmem:[#allocation21_spill] sm:$0xff] %v2907_v46  ;;  %v2909_v4 = vpop.eup %1873  ;;  %1885 = vpow2.f32 %v413_v24  ;;  %v1454_v59 = vpop.xlane.xlu0 %1453 }
 0x19c   : > { %v2911_v33 = vpop.eup %1875  ;;  %1887 = vpow2.f32 %v415_v5  ;;  %v1476_v18 = vsub.f32 %v3467_v17, %v1454_v59  ;;  %v1477_v2 = vsub.f32 %v3468_v27, %v1454_v59  ;;  %v816_v41 = vmul.f32 %v2732_v40, %v2909_v4 }
 0x19d   : > { %v817_v23 = vmul.f32 %v2744_v47, %v2911_v33 }
 0x19e   : > { %v1878_v28 = vpop.eup %1877  ;;  %v1492_v43 = vmul.f32 1.442695, %v1476_v18  ;;  %v1494_v20 = vmul.f32 1.442695, %v1477_v2  ;;  %v839_v39 = vsel %vm828_vm1, %v816_v41, 0.0 }
 0x19f   : > { %v1880_v9 = vpop.eup %1879  ;;  %v1149_v11 = vmul.f32 %v2920_v44, %v1878_v28  ;;  %v840_v40 = vsel %vm828_vm1, %v817_v23, 0.0 }
 0x1a0   : > { %v1207_v3 = vadd.f32 %v1880_v9, %v1878_v28  ;;  %v1150_v24 = vmul.f32 %v2925_v7, %v1880_v9  ;;  %1889 = vpow2.f32 %v1492_v43  ;;  %v1084_v5 = vpop.xlane.xlu1 %1083  ;;  %v2930_v59 = vadd.f32 %v840_v40, %v839_v39  ;;  %v2942_v43 = vld [vmem:[%s2275_s6 + $0xe0] sm:$0xff]  ;;  %v2960_v7 = vld [vmem:[%s2275_s6 + $0xa8] sm:$0xff] }
 0x1a1   : > { %v1171_v47 = vsel %vm240_vm0, %v1149_v11, 0.0  ;;  %1891 = vpow2.f32 %v1494_v20  ;;  %v1103_v17 = vsub.f32 %v2588_v0, %v1084_v5  ;;  %v1104_v18 = vsub.f32 %v2591_v13, %v1084_v5  ;;  %v2947_v11 = vld [vmem:[%s2275_s6 + $0xe8] sm:$0xff] }
 0x1a2   : > { %3470 = vst [vmem:[#allocation23_spill] sm:$0xff] %v2930_v59  ;;  %1208 = vadd.xlane.f32.xlu0 %v1207_v3  ;;  %v1172_v27 = vsel %vm240_vm0, %v1150_v24, 0.0  ;;  %v3472_v24 = vld [vmem:[#allocation28_spill] sm:$0xff] }
 0x1a3   : > { %v2935_v2 = vpop.eup %1881  ;;  %v2937_v41 = vadd.f32 %v1172_v27, %v1171_v47  ;;  %v1125_v23 = vmul.f32 1.442695, %v1103_v17  ;;  %v1127_v9 = vmul.f32 1.442695, %v1104_v18  ;;  %v2955_v17 = vld [vmem:[%s2275_s6 + $0xa0] sm:$0xff] }
 0x1a4   : > { %v2939_v28 = vpop.eup %1883  ;;  %v826_v20 = vmul.f32 %v2942_v43, %v2935_v2  ;;  %v1466_v0 = vpop.xlane.xlu0 %1465 }
 0x1a5   : > { %3471 = vst [vmem:[#allocation24_spill] sm:$0xff] %v2937_v41  ;;  %v827_v13 = vmul.f32 %v2947_v11, %v2939_v28  ;;  %v1886_v39 = vpop.eup %1885  ;;  %1893 = vpow2.f32 %v1125_v23  ;;  %v1484_v3 = vsub.f32 %v2598_v34, %v1466_v0  ;;  %v1485_v40 = vsub.f32 %v3472_v24, %v1466_v0 }
 0x1a6   : > { %v864_v5 = vsel %vm828_vm1, %v826_v20, 0.0  ;;  %v1888_v47 = vpop.eup %1887  ;;  %1895 = vpow2.f32 %v1127_v9  ;;  %v435_v18 = vmul.f32 %v2955_v17, %v1886_v39 }
 0x1a7   : > { %v865_v27 = vsel %vm828_vm1, %v827_v13, 0.0  ;;  %v1508_v52 = vmul.f32 1.442695, %v1484_v3  ;;  %v1510_v59 = vmul.f32 1.442695, %v1485_v40  ;;  %v373_v41 = vpop.xlane.xlu1 %372  ;;  %v496_v46 = vadd.f32 %v1888_v47, %v1886_v39 }
 0x1a8   : > { %v436_v34 = vmul.f32 %v2960_v7, %v1888_v47  ;;  %v389_v23 = vsub.f32 %v2607_v15, %v373_v41  ;;  %v390_v20 = vsub.f32 %v2610_v62, %v373_v41  ;;  %v466_v9 = vsel %vm240_vm0, %v435_v18, 0.0 }
 0x1a9   : > { %v2966_v0 = vadd.f32 %v865_v27, %v864_v5  ;;  %1897 = vpow2.f32 %v1508_v52  ;;  %497 = vadd.xlane.f32.xlu1 %v496_v46 }
 0x1aa   : > { %v467_v13 = vsel %vm240_vm0, %v436_v34, 0.0  ;;  %v2969_v3 = vpop.eup %1889  ;;  %1899 = vpow2.f32 %v1510_v59  ;;  %v417_v39 = vmul.f32 1.442695, %v389_v23  ;;  %v419_v24 = vmul.f32 1.442695, %v390_v20  ;;  %v2988_v20 = vld [vmem:[%s2275_s6 + $0x70] sm:$0xff] }
 0x1ab   : > { %v2971_v40 = vadd.f32 %v467_v13, %v466_v9  ;;  %v2973_v47 = vpop.eup %1891  ;;  %v1524_v15 = vmul.f32 %v2837_v6, %v2969_v3 }
 0x1ac   : > { %1901 = vpow2.f32 %v417_v39  ;;  %v1525_v62 = vmul.f32 %v2846_v25, %v2973_v47 }
 0x1ad   : > { %1903 = vpow2.f32 %v419_v24  ;;  %v1540_v52 = vsel %vm828_vm1, %v1524_v15, 0.0  ;;  %v2992_v15 = vld [vmem:[%s2275_s6 + $0x78] sm:$0xff] }
 0x1ae   : > { %v1541_v59 = vsel %vm828_vm1, %v1525_v62, 0.0 }
 0x1af   : > { %v1472_v46 = vpop.xlane.xlu0 %1471  ;;  %v1894_v41 = vpop.eup %1893  ;;  %v2983_v34 = vadd.f32 %v1541_v59, %v1540_v52 }
 0x1b0   : > { %v1488_v5 = vsub.f32 %v2619_v60, %v1472_v46  ;;  %v1489_v18 = vsub.f32 %v2623_v38, %v1472_v46  ;;  %v376_v27 = vpop.xlane.xlu1 %375  ;;  %v1896_v6 = vpop.eup %1895  ;;  %v1151_v9 = vmul.f32 %v2988_v20, %v1894_v41 }
 0x1b1   : > { %v391_v23 = vsub.f32 %v2621_v55, %v376_v27  ;;  %v392_v25 = vsub.f32 %v2625_v22, %v376_v27  ;;  %v1210_v24 = vadd.f32 %v1896_v6, %v1894_v41  ;;  %v1152_v60 = vmul.f32 %v2992_v15, %v1896_v6 }
 0x1b2   : > { %v1516_v13 = vmul.f32 1.442695, %v1488_v5  ;;  %v1518_v39 = vmul.f32 1.442695, %v1489_v18  ;;  %v1176_v52 = vsel %vm240_vm0, %v1151_v9, 0.0  ;;  %v1213_v18 = vadd.f32 %v2764_v51, %v2756_v8 }
 0x1b3   : > { %v421_v38 = vmul.f32 1.442695, %v391_v23  ;;  %v423_v62 = vmul.f32 1.442695, %v392_v25  ;;  %v2996_v46 = vpop.eup %1897  ;;  %1211 = vadd.xlane.f32.xlu0 %v1210_v24  ;;  %v1177_v55 = vsel %vm240_vm0, %v1152_v60, 0.0 }
 0x1b4   : > { %1905 = vpow2.f32 %v1516_v13  ;;  %v2999_v22 = vpop.eup %1899  ;;  %v3001_v59 = vadd.f32 %v1177_v55, %v1176_v52  ;;  %v1532_v41 = vmul.f32 %v2777_v16, %v2996_v46  ;;  %v1216_v16 = vadd.f32 %v2795_v30, %v2793_v21 }
 0x1b5   : > { %1907 = vpow2.f32 %v1518_v39  ;;  %v1475_v5 = vpop.xlane.xlu0 %1474  ;;  %v1533_v27 = vmul.f32 %v2785_v48, %v2999_v22  ;;  %v3015_v39 = vld [vmem:[%s2275_s6 + $0xc0] sm:$0xff] }
 0x1b6   : > { %1909 = vpow2.f32 %v421_v38  ;;  %v1902_v6 = vpop.eup %1901  ;;  %v1490_v23 = vsub.f32 %v2637_v53, %v1475_v5  ;;  %v1491_v25 = vsub.f32 %v2641_v32, %v1475_v5  ;;  %v1560_v9 = vsel %vm828_vm1, %v1532_v41, 0.0  ;;  %v3020_v53 = vld [vmem:[%s2275_s6 + $0xc8] sm:$0xff] }
 0x1b7   : > { %1911 = vpow2.f32 %v423_v62  ;;  %v1904_v13 = vpop.eup %1903  ;;  %1214 = vadd.xlane.f32.xlu0 %v1213_v18  ;;  %v437_v8 = vmul.f32 %v3015_v39, %v1902_v6  ;;  %v1561_v51 = vsel %vm828_vm1, %v1533_v27, 0.0 }
 0x1b8   : > { %v1520_v48 = vmul.f32 1.442695, %v1490_v23  ;;  %v1522_v24 = vmul.f32 1.442695, %v1491_v25  ;;  %v1093_v60 = vpop.xlane.xlu1 %1092  ;;  %v499_v38 = vadd.f32 %v1904_v13, %v1902_v6  ;;  %v438_v32 = vmul.f32 %v3020_v53, %v1904_v13 }
 0x1b9   : > { %v1109_v62 = vsub.f32 %v2639_v12, %v1093_v60  ;;  %v1110_v52 = vsub.f32 %v2649_v10, %v1093_v60  ;;  %v471_v21 = vsel %vm240_vm0, %v437_v8, 0.0  ;;  %v3026_v30 = vadd.f32 %v1561_v51, %v1560_v9  ;;  %v2047_v9 = vld [vmem:[%s2275_s6 + $0xd0] sm:$0xff]  ;;  %v2048_v8 = vld [vmem:[%s2275_s6 + $0xd8] sm:$0xff] }
 0x1ba   : > { %1913 = vpow2.f32 %v1520_v48  ;;  %500 = vadd.xlane.f32.xlu1 %v499_v38  ;;  %v472_v55 = vsel %vm240_vm0, %v438_v32, 0.0  ;;  %v1222_v10 = vadd.f32 %v2821_v19, %v2814_v45 }
 0x1bb   : > { %1915 = vpow2.f32 %v1522_v24  ;;  %v1137_v41 = vmul.f32 1.442695, %v1109_v62  ;;  %v1139_v5 = vmul.f32 1.442695, %v1110_v52  ;;  %1217 = vadd.xlane.f32.xlu0 %v1216_v16  ;;  %v3029_v18 = vadd.f32 %v472_v55, %v471_v21 }
 0x1bd   : > { %1917 = vpow2.f32 %v1137_v41  ;;  %v745_v12 = vpop.xlane.xlu1 %744 }
 0x1be   : > { %v3031_v27 = vpop.eup %1905  ;;  %1919 = vpow2.f32 %v1139_v5  ;;  %v766_v23 = vsub.f32 %v2657_v63, %v745_v12  ;;  %v767_v25 = vsub.f32 %v2660_v1, %v745_v12  ;;  %v869_v1 = vadd.f32 %v2863_v49, %v2861_v14 }
 0x1bf   : > { %v3035_v6 = vpop.eup %1907  ;;  %v1536_v13 = vmul.f32 %v2047_v9, %v3031_v27  ;;  %1223 = vadd.xlane.f32.xlu0 %v1222_v10  ;;  %v881_v14 = vadd.f32 %v2889_v29, %v2886_v61 }
 0x1c0   : > { %v3041_v16 = vpop.eup %1909  ;;  %v1537_v51 = vmul.f32 %v2048_v8, %v3035_v6  ;;  %v784_v24 = vmul.f32 1.442695, %v766_v23  ;;  %v786_v19 = vmul.f32 1.442695, %v767_v25 }
 0x1c1   : > { %v3045_v48 = vpop.eup %1911  ;;  %v1570_v45 = vsel %vm828_vm1, %v1536_v13, 0.0  ;;  %v757_v60 = vpop.xlane.xlu1 %756 }
 0x1c2   : > { %v502_v63 = vadd.f32 %v3045_v48, %v3041_v16  ;;  %v1571_v38 = vsel %vm828_vm1, %v1537_v51, 0.0  ;;  %1921 = vpow2.f32 %v784_v24  ;;  %v774_v32 = vsub.f32 %v2666_v58, %v757_v60 }
 0x1c3   : > { %v775_v62 = vsub.f32 %v2668_v36, %v757_v60  ;;  %1923 = vpow2.f32 %v786_v19  ;;  %870 = vadd.xlane.f32.xlu0 %v869_v1  ;;  %v3055_v52 = vadd.f32 %v1571_v38, %v1570_v45 }
 0x1c4   : > { %503 = vadd.xlane.f32.xlu1 %v502_v63  ;;  %v3057_v21 = vpop.eup %1913  ;;  %v800_v55 = vmul.f32 1.442695, %v774_v32  ;;  %v890_v32 = vadd.f32 %v2939_v28, %v2935_v2  ;;  %v1580_v2 = vadd.f32 %v2973_v47, %v2969_v3 }
 0x1c5   : > { %v802_v41 = vmul.f32 1.442695, %v775_v62  ;;  %v3059_v5 = vpop.eup %1915  ;;  %v760_v12 = vpop.xlane.xlu1 %759  ;;  %v1538_v58 = vmul.f32 %v2832_v37, %v3057_v21  ;;  %v875_v37 = vadd.f32 %v2911_v33, %v2909_v4 }
 0x1c6   : > { %1925 = vpow2.f32 %v800_v55  ;;  %v776_v36 = vsub.f32 %v2677_v56, %v760_v12  ;;  %v777_v49 = vsub.f32 %v2679_v42, %v760_v12  ;;  %v1539_v23 = vmul.f32 %v2841_v54, %v3059_v5 }
 0x1c7   : > { %v1918_v10 = vpop.eup %1917  ;;  %1927 = vpow2.f32 %v802_v41  ;;  %882 = vadd.xlane.f32.xlu0 %v881_v14  ;;  %v1575_v25 = vsel %vm828_vm1, %v1538_v58, 0.0 }
 0x1c8   : > { %v1920_v13 = vpop.eup %1919  ;;  %v804_v51 = vmul.f32 1.442695, %v776_v36  ;;  %v806_v24 = vmul.f32 1.442695, %v777_v49  ;;  %v1157_v61 = vmul.f32 %v2047_v9, %v1918_v10  ;;  %v1576_v56 = vsel %vm828_vm1, %v1539_v23, 0.0 }
 0x1c9   : > { %v1219_v29 = vadd.f32 %v1920_v13, %v1918_v10  ;;  %v1158_v19 = vmul.f32 %v2048_v8, %v1920_v13  ;;  %v3074_v60 = vadd.f32 %v1576_v56, %v1575_v25 }
 0x1ca   : > { %1929 = vpow2.f32 %v804_v51  ;;  %v751_v42 = vpop.xlane.xlu1 %750  ;;  %v1191_v45 = vsel %vm240_vm0, %v1157_v61, 0.0  ;;  %v1592_v51 = vadd.f32 %v2999_v22, %v2996_v46 }
 0x1cb   : > { %1931 = vpow2.f32 %v806_v24  ;;  %v770_v54 = vsub.f32 %v2685_v50, %v751_v42  ;;  %v771_v63 = vsub.f32 %v2690_v35, %v751_v42  ;;  %1220 = vadd.xlane.f32.xlu1 %v1219_v29  ;;  %876 = vadd.xlane.f32.xlu0 %v875_v37  ;;  %v1192_v9 = vsel %vm240_vm0, %v1158_v19, 0.0  ;;  %v3475_v37 = vld [vmem:[#allocation31_spill] sm:$0xff] }
 0x1cc   : > { %v3079_v1 = vpop.eup %1921  ;;  %v3081_v4 = vadd.f32 %v1192_v9, %v1191_v45 }
 0x1cd   : > { %v3083_v33 = vpop.eup %1923  ;;  %v792_v8 = vmul.f32 1.442695, %v770_v54  ;;  %v794_v38 = vmul.f32 1.442695, %v771_v63  ;;  %v3476_v63 = vld [vmem:[#allocation39_spill] sm:$0xff] }
 0x1ce   : > { %v1457_v62 = vpop.xlane.xlu1 %1456  ;;  %v872_v50 = vadd.f32 %v3083_v33, %v3079_v1 }
 0x1cf   : > { %1933 = vpow2.f32 %v792_v8  ;;  %v1478_v35 = vsub.f32 %v2696_v26, %v1457_v62  ;;  %v1479_v55 = vsub.f32 %v2698_v31, %v1457_v62  ;;  %891 = vadd.xlane.f32.xlu0 %v890_v32  ;;  %v3473_v31 = vld [vmem:[#allocation29_spill] sm:$0xff]  ;;  %v3477_v32 = vld [vmem:[#allocation40_spill] sm:$0xff] }
 0x1d0   : > { %v3091_v41 = vpop.eup %1925  ;;  %1935 = vpow2.f32 %v794_v38  ;;  %873 = vadd.xlane.f32.xlu1 %v872_v50  ;;  %v3478_v50 = vld [vmem:[#allocation32_spill] sm:$0xff] }
 0x1d1   : > { %v3093_v12 = vpop.eup %1927  ;;  %v1496_v14 = vmul.f32 1.442695, %v1478_v35  ;;  %v1498_v58 = vmul.f32 1.442695, %v1479_v55  ;;  %v3479_v55 = vld [vmem:[#allocation33_spill] sm:$0xff] }
 0x1d2   : > { %v1469_v28 = vpop.xlane.xlu1 %1468  ;;  %v884_v36 = vadd.f32 %v3093_v12, %v3091_v41 }
 0x1d3   : > { %1937 = vpow2.f32 %v1496_v14  ;;  %v1486_v26 = vsub.f32 %v2705_v57, %v1469_v28  ;;  %v1487_v49 = vsub.f32 %v3473_v31, %v1469_v28  ;;  %1581 = vadd.xlane.f32.xlu0 %v1580_v2  ;;  %v3474_v57 = vld [vmem:[#allocation30_spill] sm:$0xff] }
 0x1d4   : > { %v1930_v10 = vpop.eup %1929  ;;  %1939 = vpow2.f32 %v1498_v58  ;;  %885 = vadd.xlane.f32.xlu1 %v884_v36 }
 0x1d5   : > { %v1932_v23 = vpop.eup %1931  ;;  %v1512_v25 = vmul.f32 1.442695, %v1486_v26  ;;  %v1514_v13 = vmul.f32 1.442695, %v1487_v49  ;;  %v824_v3 = vmul.f32 %v3015_v39, %v1930_v10  ;;  %v1598_v39 = vadd.f32 %v3035_v6, %v3031_v27  ;;  %v3480_v49 = vld [vmem:[#allocation15_spill] sm:$0xff] }
 0x1d6   : > { %v887_v24 = vadd.f32 %v1932_v23, %v1930_v10  ;;  %v825_v61 = vmul.f32 %v3020_v53, %v1932_v23  ;;  %v1601_v27 = vadd.f32 %v3059_v5, %v3057_v21 }
 0x1d7   : > { %v1460_v47 = vpop.xlane.xlu1 %1459  ;;  %1941 = vpow2.f32 %v1512_v25  ;;  %1593 = vadd.xlane.f32.xlu0 %v1592_v51  ;;  %v859_v56 = vsel %vm828_vm1, %v824_v3, 0.0  ;;  %v3481_v25 = vld [vmem:[#allocation18_spill] sm:$0xff] }
 0x1d8   : > { %v1480_v29 = vsub.f32 %v3474_v57, %v1460_v47  ;;  %v1481_v19 = vsub.f32 %v3475_v37, %v1460_v47  ;;  %1943 = vpow2.f32 %v1514_v13  ;;  %888 = vadd.xlane.f32.xlu1 %v887_v24  ;;  %v860_v42 = vsel %vm828_vm1, %v825_v61, 0.0  ;;  %v3482_v24 = vld [vmem:[#allocation10_spill] sm:$0xff]  ;;  %v3484_v37 = vld [vmem:[#allocation11_spill] sm:$0xff] }
 0x1d9   : > { %v1934_v45 = vpop.eup %1933  ;;  %v3111_v54 = vadd.f32 %v860_v42, %v859_v56 }
 0x1da   : > { %v1500_v46 = vmul.f32 1.442695, %v1480_v29  ;;  %v1502_v22 = vmul.f32 1.442695, %v1481_v19  ;;  %v1936_v53 = vpop.eup %1935  ;;  %v818_v9 = vmul.f32 %v3476_v63, %v1934_v45  ;;  %v3483_v29 = vld [vmem:[#allocation37_spill] sm:$0xff] }
 0x1db   : > { %v1463_v8 = vpop.xlane.xlu1 %1462  ;;  %v878_v38 = vadd.f32 %v1936_v53, %v1934_v45  ;;  %1599 = vadd.xlane.f32.xlu0 %v1598_v39  ;;  %v819_v62 = vmul.f32 %v3477_v32, %v1936_v53  ;;  %v440_v39 = vmul.f32 %v2947_v11, %v3045_v48 }
 0x1dc   : > { %1945 = vpow2.f32 %v1500_v46  ;;  %v1482_v35 = vsub.f32 %v3478_v50, %v1463_v8  ;;  %v1483_v14 = vsub.f32 %v3479_v55, %v1463_v8  ;;  %v844_v58 = vsel %vm828_vm1, %v818_v9, 0.0  ;;  %v3485_v8 = vld [vmem:[#allocation13_spill] sm:$0xff] }
 0x1dd   : > { %1947 = vpow2.f32 %v1502_v22  ;;  %v1938_v2 = vpop.eup %1937  ;;  %879 = vadd.xlane.f32.xlu1 %v878_v38  ;;  %v845_v6 = vsel %vm828_vm1, %v819_v62, 0.0  ;;  %v439_v22 = vmul.f32 %v2942_v43, %v3041_v16  ;;  %v3486_v38 = vld [vmem:[#allocation22_spill] sm:$0xff]  ;;  %v477_v43 = vsel %vm240_vm0, %v440_v39, 0.0 }
 0x1de   : > { %v1940_v28 = vpop.eup %1939  ;;  %v1504_v36 = vmul.f32 1.442695, %v1482_v35  ;;  %v1506_v26 = vmul.f32 1.442695, %v1483_v14  ;;  %v3121_v31 = vadd.f32 %v845_v6, %v844_v58  ;;  %v1526_v10 = vmul.f32 %v3480_v49, %v1938_v2  ;;  %v3492_v49 = vld [vmem:[#allocation9_spill] sm:$0xff] }
 0x1df   : > { %v1583_v23 = vadd.f32 %v1940_v28, %v1938_v2  ;;  %1602 = vadd.xlane.f32.xlu0 %v1601_v27  ;;  %v1527_v13 = vmul.f32 %v3481_v25, %v1940_v28  ;;  %v476_v55 = vsel %vm240_vm0, %v439_v22, 0.0  ;;  %v3487_v28 = vld [vmem:[#allocation35_spill] sm:$0xff] }
 0x1e0   : > { %1949 = vpow2.f32 %v1504_v36  ;;  %v1545_v51 = vsel %vm828_vm1, %v1526_v10, 0.0  ;;  %v478_v58 = vadd.f32 %v477_v43, %v476_v55  ;;  %v3488_v36 = vld [vmem:[#allocation19_spill] sm:$0xff]  ;;  %v815_v10 = vmul.f32 %v3492_v49, %v3083_v33 }
 0x1e1   : > { %v1942_v3 = vpop.eup %1941  ;;  %1951 = vpow2.f32 %v1506_v26  ;;  %1584 = vadd.xlane.f32.xlu1 %v1583_v23  ;;  %v1546_v21 = vsel %vm828_vm1, %v1527_v13, 0.0  ;;  %v3489_v26 = vld [vmem:[#allocation36_spill] sm:$0xff] }
 0x1e2   : > { %v1944_v5 = vpop.eup %1943  ;;  %v3127_v47 = vadd.f32 %v1546_v21, %v1545_v51  ;;  %v1534_v61 = vmul.f32 %v3482_v24, %v1942_v3  ;;  %v3493_v23 = vld [vmem:[#allocation12_spill] sm:$0xff]  ;;  %v835_v13 = vsel %vm828_vm1, %v815_v10, 0.0  ;;  %v822_v51 = vmul.f32 %v2955_v17, %v3091_v41  ;;  %v3495_v21 = vld [vmem:[#allocation14_spill] sm:$0xff]  ;;  %v3498_v17 = vld [vmem:[#allocation23_spill] sm:$0xff] }
 0x1e3   : > { %v1595_v57 = vadd.f32 %v1944_v5, %v1942_v3  ;;  %449 = vadd.xlane.f32.xlu0 %v3483_v29  ;;  %v1535_v19 = vmul.f32 %v3484_v37, %v1944_v5  ;;  %v3494_v3 = vld [vmem:[#allocation16_spill] sm:$0xff] }
 0x1e4   : > { %v1565_v56 = vsel %vm828_vm1, %v1534_v61, 0.0  ;;  %v854_v33 = vsel %vm828_vm1, %v822_v51, 0.0  ;;  %v3496_v24 = vld [vmem:[#allocation24_spill] sm:$0xff]  ;;  %v3497_v61 = vld [vmem:[#allocation38_spill] sm:$0xff] }
 0x1e5   : > { %1596 = vadd.xlane.f32.xlu1 %v1595_v57  ;;  %v1566_v45 = vsel %vm828_vm1, %v1535_v19, 0.0  ;;  %v3500_v41 = vld [vmem:[#allocation20_spill] sm:$0xff] }
 0x1e6   : > { %v1946_v42 = vpop.eup %1945  ;;  %v1567_v53 = vadd.f32 %v1566_v45, %v1565_v56 }
 0x1e7   : > { %v1948_v46 = vpop.eup %1947  ;;  %v1528_v63 = vmul.f32 %v2920_v44, %v1946_v42  ;;  %459 = vadd.xlane.f32.xlu0 %v3485_v8 }
 0x1e8   : > { %v1586_v9 = vadd.f32 %v1948_v46, %v1946_v42  ;;  %v1529_v32 = vmul.f32 %v3486_v38, %v1948_v46 }
 0x1e9   : > { %v1550_v62 = vsel %vm828_vm1, %v1528_v63, 0.0 }
 0x1ea   : > { %1587 = vadd.xlane.f32.xlu1 %v1586_v9  ;;  %v1551_v50 = vsel %vm828_vm1, %v1529_v32, 0.0  ;;  %v1950_v35 = vpop.eup %1949 }
 0x1eb   : > { %v1552_v16 = vadd.f32 %v1551_v50, %v1550_v62  ;;  %v1952_v11 = vpop.eup %1951  ;;  %469 = vadd.xlane.f32.xlu0 %v2971_v40  ;;  %v1530_v44 = vmul.f32 %v2988_v20, %v1950_v35  ;;  %v3490_v40 = vld [vmem:[#allocation21_spill] sm:$0xff]  ;;  %v3491_v20 = vld [vmem:[#allocation34_spill] sm:$0xff] }
 0x1ec   : > { %v1589_v48 = vadd.f32 %v1952_v11, %v1950_v35  ;;  %v1531_v14 = vmul.f32 %v2992_v15, %v1952_v11  ;;  %v814_v15 = vmul.f32 %v3491_v20, %v3079_v1 }
 0x1ed   : > { %v1555_v2 = vsel %vm828_vm1, %v1530_v44, 0.0  ;;  %v529_v44 = vlaneseq }
 0x1ee   : > { %1590 = vadd.xlane.f32.xlu1 %v1589_v48  ;;  %v1556_v27 = vsel %vm828_vm1, %v1531_v14, 0.0  ;;  %v834_v25 = vsel %vm828_vm1, %v814_v15, 0.0 }
 0x1ef   : > { %479 = vadd.xlane.f32.xlu0 %v478_v58  ;;  %v1557_v6 = vadd.f32 %v1556_v27, %v1555_v2  ;;  %v836_v1 = vadd.f32 %v835_v13, %v834_v25  ;;  %v530_v58 = vand.u32 127, %v529_v44  ;;  %v532_v2 = vshrl.u32 %v529_v44, 7 }
 0x1f2   : > { %444 = vadd.xlane.f32.xlu1 %v3487_v28 }
 0x1f3   : > { %1169 = vadd.xlane.f32.xlu0 %v3488_v36  ;;  %v3227_v36 = vsub.s32 %v530_v58, %v532_v2 }
 0x1f6   : > { %454 = vadd.xlane.f32.xlu1 %v3489_v26 }
 0x1f7   : > { %1179 = vadd.xlane.f32.xlu0 %v3001_v59  ;;  %v823_v59 = vmul.f32 %v2960_v7, %v3093_v12  ;;  %v3499_v7 = vld [vmem:[#allocation17_spill] sm:$0xff] }
 0x1f9   : > { %v855_v5 = vsel %vm828_vm1, %v823_v59, 0.0 }
 0x1fa   : > { %464 = vadd.xlane.f32.xlu1 %v3490_v40 }
 0x1fb   : > { %1189 = vadd.xlane.f32.xlu0 %v3493_v23 }
 0x1fe   : > { %474 = vadd.xlane.f32.xlu1 %v3029_v18  ;;  %v856_v18 = vadd.f32 %v855_v5, %v854_v33 }
 0x1ff   : > { %1199 = vadd.xlane.f32.xlu0 %v3494_v3 }
 0x202   : > { %1164 = vadd.xlane.f32.xlu1 %v3495_v21 }
 0x203   : > { %837 = vadd.xlane.f32.xlu0 %v836_v1 }
 0x206   : > { %1174 = vadd.xlane.f32.xlu1 %v3496_v24 }
 0x207   : > { %857 = vadd.xlane.f32.xlu0 %v856_v18 }
 0x20a   : > { %1184 = vadd.xlane.f32.xlu1 %v3497_v61 }
 0x20b   : > { %842 = vadd.xlane.f32.xlu0 %v3498_v17 }
 0x20e   : > { %1194 = vadd.xlane.f32.xlu1 %v3081_v4 }
 0x20f   : > { %867 = vadd.xlane.f32.xlu0 %v2966_v0  ;;  %v486_v0 = vpop.xlane.xlu0 %485 }
 0x210   : > { %1953 = vrcp.f32 %v486_v0  ;;  %v1249_v0 = vadd.s32 4294967288, %v530_v58 }
 0x212   : > { %832 = vadd.xlane.f32.xlu1 %v3499_v7 }
 0x213   : > { %1543 = vadd.xlane.f32.xlu0 %v2983_v34  ;;  %v492_v4 = vpop.xlane.xlu0 %491  ;;  %v483_v34 = vpop.xlane.xlu1 %482 }
 0x214   : > { %1955 = vrcp.f32 %v483_v34 }
 0x215   : > { %1957 = vrcp.f32 %v492_v4 }
 0x216   : > { %852 = vadd.xlane.f32.xlu1 %v3500_v41 }
 0x217   : > { %1563 = vadd.xlane.f32.xlu0 %v3026_v30  ;;  %v489_v57 = vpop.xlane.xlu1 %488 }
 0x218   : > { %1959 = vrcp.f32 %v489_v57 }
 0x21a   : > { %862 = vadd.xlane.f32.xlu1 %v3111_v54 }
 0x21b   : > { %1573 = vadd.xlane.f32.xlu0 %v3055_v52  ;;  %v1203_v30 = vpop.xlane.xlu1 %1202 }
 0x21e   : > { %847 = vadd.xlane.f32.xlu1 %v3121_v31  ;;  %v1206_v12 = vpop.xlane.xlu0 %1205 }
 0x21f   : > { %1578 = vadd.xlane.f32.xlu0 %v3074_v60 }
 0x222   : > { %1548 = vadd.xlane.f32.xlu1 %v3127_v47 }
 0x225   : > { %v495_v37 = vpop.xlane.xlu1 %494 }
 0x226   : > { %1568 = vadd.xlane.f32.xlu1 %v1567_v53 }
 0x22a   : > { %1553 = vadd.xlane.f32.xlu1 %v1552_v16 }
 0x22e   : > { %1558 = vadd.xlane.f32.xlu1 %v1557_v6  ;;  %v1954_v6 = vpop.eup %1953 }
 0x22f   : > { %v3185_v29 = vpop.xlane.xlu0 %1208  ;;  %v1956_v28 = vpop.eup %1955 }
 0x230   : > { %v1958_v20 = vpop.eup %1957 }
 0x231   : > { %v1960_v23 = vpop.eup %1959 }
 0x236   : > { %v498_v31 = vpop.xlane.xlu1 %497 }
 0x237   : > { %1961 = vrcp.f32 %v498_v31 }
 0x238   : > { %1963 = vrcp.f32 %v495_v37 }
 0x240   : > { %v1212_v54 = vpop.xlane.xlu0 %1211 }
 0x241   : > { %v1962_v21 = vpop.eup %1961 }
 0x242   : > { %v1964_v5 = vpop.eup %1963 }
 0x244   : > { %v3187_v52 = vpop.xlane.xlu0 %1214 }
 0x247   : > { %v501_v60 = vpop.xlane.xlu1 %500 }
 0x248   : > { %v3189_v19 = vpop.xlane.xlu0 %1217 }
 0x24c   : > { %v3191_v47 = vpop.xlane.xlu0 %1223 }
 0x250   : > { %v3193_v56 = vpop.xlane.xlu0 %870 }
 0x251   : > { %v504_v42 = vpop.xlane.xlu1 %503 }
 0x252   : > { %1965 = vrcp.f32 %v504_v42 }
 0x253   : > { %1967 = vrcp.f32 %v1206_v12 }
 0x254   : > { %v3195_v45 = vpop.xlane.xlu0 %882  ;;  %1969 = vrcp.f32 %v501_v60 }
 0x255   : > { %1971 = vrcp.f32 %v1203_v30 }
 0x256   : > { %1973 = vrcp.f32 %v1212_v54 }
 0x257   : > { %1975 = vrcp.f32 %v3185_v29 }
 0x258   : > { %v3197_v46 = vpop.xlane.xlu1 %1220  ;;  %v3199_v22 = vpop.xlane.xlu0 %876  ;;  %1977 = vrcp.f32 %v3189_v19 }
 0x259   : > { %1979 = vrcp.f32 %v3187_v52 }
 0x25a   : > { %1981 = vrcp.f32 %v3191_v47 }
 0x25b   : > { %1983 = vrcp.f32 %v3197_v46 }
 0x25c   : > { %v3201_v39 = vpop.xlane.xlu0 %891  ;;  %v1966_v17 = vpop.eup %1965  ;;  %1985 = vrcp.f32 %v3193_v56 }
 0x25d   : > { %v3203_v53 = vpop.xlane.xlu1 %873  ;;  %v1968_v57 = vpop.eup %1967 }
 0x25e   : > { %v1970_v54 = vpop.eup %1969 }
 0x260   : > { %v3205_v63 = vpop.xlane.xlu0 %1581 }
 0x261   : > { %v3207_v9 = vpop.xlane.xlu1 %885 }
 0x262   : > { %1987 = vrcp.f32 %v3207_v9 }
 0x263   : > { %1989 = vrcp.f32 %v3195_v45 }
 0x264   : > { %v3209_v8 = vpop.xlane.xlu0 %1593  ;;  %1991 = vrcp.f32 %v3201_v39 }
 0x265   : > { %v3211_v38 = vpop.xlane.xlu1 %888  ;;  %1993 = vrcp.f32 %v3203_v53 }
 0x266   : > { %1995 = vrcp.f32 %v3199_v22 }
 0x267   : > { %1997 = vrcp.f32 %v3211_v38 }
 0x268   : > { %v3213_v32 = vpop.xlane.xlu0 %1599 }
 0x26a   : > { %v3215_v62 = vpop.xlane.xlu1 %879 }
 0x26b   : > { %1999 = vrcp.f32 %v3215_v62 }
 0x26c   : > { %v3217_v50 = vpop.xlane.xlu0 %1602  ;;  %2001 = vrcp.f32 %v3209_v8 }
 0x26e   : > { %v3219_v35 = vpop.xlane.xlu1 %1584 }
 0x270   : > { %v450_v55 = vpop.xlane.xlu0 %449 }
 0x271   : > { %v514_v26 = vmul.f32 %v1954_v6, %v450_v55  ;;  %v3241_v55 = vsub.s32 %v1249_v0, %v532_v2 }
 0x272   : > { %v3221_v43 = vpop.xlane.xlu1 %1596 }
 0x273   : > { %v538_v25 = vrot.slane %v514_v26, %v3227_v36 }
 0x274   : > { %v460_v16 = vpop.xlane.xlu0 %459 }
 0x275   : > { %v516_v10 = vmul.f32 %v1958_v20, %v460_v16 }
 0x277   : > { %v3223_v11 = vpop.xlane.xlu1 %1587  ;;  %v546_v1 = vrot.slane %v516_v10, %v3227_v36 }
 0x278   : > { %v470_v48 = vpop.xlane.xlu0 %469 }
 0x279   : > { %v518_v24 = vmul.f32 %v1962_v21, %v470_v48  ;;  %v1972_v48 = vpop.eup %1971  ;;  %2003 = vrcp.f32 %v3213_v32 }
 0x27a   : > { %v1974_v6 = vpop.eup %1973  ;;  %2005 = vrcp.f32 %v3217_v50 }
 0x27b   : > { %v3225_v14 = vpop.xlane.xlu1 %1590  ;;  %v554_v37 = vrot.slane %v518_v24, %v3227_v36 }
 0x27c   : > { %v480_v27 = vpop.xlane.xlu0 %479 }
 0x27d   : > { %v520_v12 = vmul.f32 %v1966_v17, %v480_v27 }
 0x27f   : > { %v445_v40 = vpop.xlane.xlu1 %444  ;;  %v562_v44 = vrot.slane %v520_v12, %v3227_v36 }
 0x280   : > { %v513_v15 = vmul.f32 %v1956_v28, %v445_v40  ;;  %v1170_v49 = vpop.xlane.xlu0 %1169 }
 0x281   : > { %v1234_v29 = vmul.f32 %v1968_v57, %v1170_v49 }
 0x282   : > { %v534_v13 = vrot.slane %v513_v15, %v3227_v36  ;;  %v1976_v15 = vpop.eup %1975  ;;  %2007 = vrcp.f32 %v3221_v43 }
 0x283   : > { %v455_v51 = vpop.xlane.xlu1 %454  ;;  %v1257_v28 = vrot.slane %v1234_v29, %v3241_v55  ;;  %v1978_v10 = vpop.eup %1977  ;;  %2009 = vrcp.f32 %v3205_v63 }
 0x284   : > { %v515_v59 = vmul.f32 %v1960_v23, %v455_v51  ;;  %v1180_v3 = vpop.xlane.xlu0 %1179  ;;  %v564_v18 = vsel %vm563_vm2, %v538_v25, %v534_v13  ;;  %v1980_v21 = vpop.eup %1979  ;;  %2011 = vrcp.f32 %v3219_v35 }
 0x285   : > { %v1236_v47 = vmul.f32 %v1974_v6, %v1180_v3  ;;  %v1982_v3 = vpop.eup %1981  ;;  %2013 = vrcp.f32 %v3223_v11 }
 0x286   : > { %v542_v33 = vrot.slane %v515_v59, %v3227_v36  ;;  %v1984_v56 = vpop.eup %1983  ;;  %2015 = vrcp.f32 %v3225_v14 }
 0x287   : > { %v465_v61 = vpop.xlane.xlu1 %464  ;;  %v1265_v51 = vrot.slane %v1236_v47, %v3241_v55  ;;  %v1986_v53 = vpop.eup %1985 }
 0x288   : > { %v566_v7 = vsel %vm565_vm3, %v542_v33, %v564_v18  ;;  %v517_v41 = vmul.f32 %v1964_v5, %v465_v61  ;;  %v1190_v4 = vpop.xlane.xlu0 %1189 }
 0x289   : > { %v568_v34 = vsel %vm567_vm4, %v546_v1, %v566_v7  ;;  %v1238_v59 = vmul.f32 %v1978_v10, %v1190_v4 }
 0x28a   : > { %v550_v30 = vrot.slane %v517_v41, %v3227_v36 }
 0x28b   : > { %v475_v31 = vpop.xlane.xlu1 %474  ;;  %v1273_v24 = vrot.slane %v1238_v59, %v3241_v55 }
 0x28c   : > { %v570_v60 = vsel %vm569_vm5, %v550_v30, %v568_v34  ;;  %v519_v42 = vmul.f32 %v1970_v54, %v475_v31  ;;  %v1200_v16 = vpop.xlane.xlu0 %1199  ;;  %v1988_v54 = vpop.eup %1987 }
 0x28d   : > { %v572_v58 = vsel %vm571_vm6, %v554_v37, %v570_v60  ;;  %v1240_v17 = vmul.f32 %v1982_v3, %v1200_v16  ;;  %v1990_v37 = vpop.eup %1989 }
 0x28e   : > { %v558_v19 = vrot.slane %v519_v42, %v3227_v36  ;;  %v1992_v60 = vpop.eup %1991 }
 0x28f   : > { %v1165_v27 = vpop.xlane.xlu1 %1164  ;;  %v1281_v45 = vrot.slane %v1240_v17, %v3241_v55  ;;  %v1994_v16 = vpop.eup %1993 }
 0x290   : > { %v574_v2 = vsel %vm573_vm7, %v558_v19, %v572_v58  ;;  %v1233_v26 = vmul.f32 %v1972_v48, %v1165_v27  ;;  %v838_v52 = vpop.xlane.xlu0 %837  ;;  %v1996_v19 = vpop.eup %1995 }
 0x291   : > { %v576_v40 = vsel %vm575_vm8, %v562_v44, %v574_v2  ;;  %v902_v48 = vmul.f32 %v1994_v16, %v838_v52  ;;  %v1998_v27 = vpop.eup %1997 }
 0x292   : > { %579 = vst.msk [vmem:[#allocation2] sm:$0xff] %vm578_vm9, %v576_v40  ;;  %v1253_v20 = vrot.slane %v1233_v26, %v3241_v55  ;;  %v2000_v47 = vpop.eup %1999 }
 0x293   : > { %v1175_v49 = vpop.xlane.xlu1 %1174  ;;  %v924_v32 = vrot.slane %v902_v48, %v3227_v36  ;;  %v2002_v35 = vpop.eup %2001 }
 0x294   : > { %v1282_v23 = vsel %vm563_vm2, %v1257_v28, %v1253_v20  ;;  %v1235_v25 = vmul.f32 %v1976_v15, %v1175_v49  ;;  %v858_v13 = vpop.xlane.xlu0 %857 }
 0x295   : > { %v906_v31 = vmul.f32 %v1988_v54, %v858_v13 }
 0x296   : > { %v1261_v1 = vrot.slane %v1235_v25, %v3241_v55 }
 0x297   : > { %v1185_v46 = vpop.xlane.xlu1 %1184  ;;  %v940_v62 = vrot.slane %v906_v31, %v3227_v36 }
 0x298   : > { %v1283_v33 = vsel %vm565_vm3, %v1261_v1, %v1282_v23  ;;  %v1237_v5 = vmul.f32 %v1980_v21, %v1185_v46  ;;  %v843_v18 = vpop.xlane.xlu0 %842  ;;  %v2004_v1 = vpop.eup %2003 }
 0x299   : > { %v1284_v61 = vsel %vm567_vm4, %v1265_v51, %v1283_v33  ;;  %v903_v2 = vmul.f32 %v1996_v19, %v843_v18  ;;  %v2006_v3 = vpop.eup %2005 }
 0x29a   : > { %v1269_v7 = vrot.slane %v1237_v5, %v3241_v55  ;;  %v2008_v5 = vpop.eup %2007 }
 0x29b   : > { %v1195_v41 = vpop.xlane.xlu1 %1194  ;;  %v928_v15 = vrot.slane %v903_v2, %v3227_v36 }
 0x29c   : > { %v1285_v9 = vsel %vm569_vm5, %v1269_v7, %v1284_v61  ;;  %v1239_v0 = vmul.f32 %v1984_v56, %v1195_v41  ;;  %v868_v4 = vpop.xlane.xlu0 %867 }
 0x29d   : > { %v1286_v34 = vsel %vm571_vm6, %v1273_v24, %v1285_v9  ;;  %v908_v44 = vmul.f32 %v1992_v60, %v868_v4 }
 0x29e   : > { %v1277_v39 = vrot.slane %v1239_v0, %v3241_v55 }
 0x29f   : > { %v833_v12 = vpop.xlane.xlu1 %832  ;;  %v948_v8 = vrot.slane %v908_v44, %v3227_v36 }
 0x2a0   : > { %v1287_v57 = vsel %vm573_vm7, %v1277_v39, %v1286_v34  ;;  %v3272_v30 = vpop.xlane.xlu0 %1543  ;;  %v901_v58 = vmul.f32 %v1986_v53, %v833_v12 }
 0x2a1   : > { %v1288_v22 = vsel %vm575_vm8, %v1281_v45, %v1287_v57 }
 0x2a2   : > { %v920_v52 = vrot.slane %v901_v58, %v3227_v36 }
 0x2a3   : > { %v853_v38 = vpop.xlane.xlu1 %852 }
 0x2a4   : > { %v905_v42 = vmul.f32 %v1990_v37, %v853_v38  ;;  %v1564_v29 = vpop.xlane.xlu0 %1563  ;;  %v949_v23 = vsel %vm571_vm6, %v924_v32, %v920_v52 }
 0x2a5   : > { %v950_v13 = vsel %vm573_vm7, %v928_v15, %v949_v23  ;;  %v1616_v46 = vmul.f32 %v2002_v35, %v1564_v29 }
 0x2a6   : > { %v936_v6 = vrot.slane %v905_v42, %v3227_v36 }
 0x2a7   : > { %v863_v28 = vpop.xlane.xlu1 %862  ;;  %v1647_v24 = vrot.slane %v1616_v46, %v3241_v55 }
 0x2a8   : > { %v907_v26 = vmul.f32 %v1998_v27, %v863_v28  ;;  %v1574_v40 = vpop.xlane.xlu0 %1573  ;;  %v952_v20 = vsel %vm563_vm2, %v940_v62, %v936_v6 }
 0x2a9   : > { %v1618_v11 = vmul.f32 %v2004_v1, %v1574_v40 }
 0x2aa   : > { %v944_v50 = vrot.slane %v907_v26, %v3227_v36 }
 0x2ab   : > { %v848_v43 = vpop.xlane.xlu1 %847  ;;  %v1655_v7 = vrot.slane %v1618_v11, %v3241_v55 }
 0x2ac   : > { %v953_v49 = vsel %vm565_vm3, %v944_v50, %v952_v20  ;;  %v904_v10 = vmul.f32 %v2000_v47, %v848_v43  ;;  %v1579_v59 = vpop.xlane.xlu0 %1578 }
 0x2ad   : > { %v954_v63 = vsel %vm567_vm4, %v948_v8, %v953_v49  ;;  %v1619_v33 = vmul.f32 %v2006_v3, %v1579_v59 }
 0x2ae   : > { %960 = vst.msk [vmem:[#allocation2 + $0x4] sm:$0xf] %vm959_vm10, %v954_v63  ;;  %v932_v25 = vrot.slane %v904_v10, %v3227_v36  ;;  %v2010_v36 = vpop.eup %2009 }
 0x2af   : > { %v1549_v51 = vpop.xlane.xlu1 %1548  ;;  %v2012_v17 = vpop.eup %2011  ;;  %v1612_v56 = vmul.f32 %v2010_v36, %v3272_v30  ;;  %v1659_v14 = vrot.slane %v1619_v33, %v3241_v55 }
 0x2b0   : > { %v951_v21 = vsel %vm575_vm8, %v932_v25, %v950_v13  ;;  %v1613_v41 = vmul.f32 %v2012_v17, %v1549_v51  ;;  %v2014_v0 = vpop.eup %2013 }
 0x2b1   : > { %958 = vst.msk [vmem:[#allocation2 - $0x4] sm:$0xf0] %vm957_vm11, %v951_v21  ;;  %v1631_v12 = vrot.slane %v1612_v56, %v3241_v55  ;;  %v2016_v53 = vpop.eup %2015 }
 0x2b2   : > { %1291 = vst.msk [vmem:[#allocation2] sm:$0xff] %vm1290_vm12, %v1288_v22  ;;  %v1635_v57 = vrot.slane %v1613_v41, %v3241_v55 }
 0x2b3   : > { %v1569_v18 = vpop.xlane.xlu1 %1568 }
 0x2b4   : > { %v1617_v61 = vmul.f32 %v2008_v5, %v1569_v18  ;;  %v1660_v31 = vsel %vm571_vm6, %v1635_v57, %v1631_v12 }
 0x2b6   : > { %v1651_v9 = vrot.slane %v1617_v61, %v3241_v55 }
 0x2b7   : > { %v1554_v4 = vpop.xlane.xlu1 %1553 }
 0x2b8   : > { %v1663_v45 = vsel %vm563_vm2, %v1651_v9, %v1647_v24  ;;  %v1614_v34 = vmul.f32 %v2014_v0, %v1554_v4 }
 0x2b9   : > { %v1664_v39 = vsel %vm565_vm3, %v1655_v7, %v1663_v45 }
 0x2ba   : > { %v1665_v30 = vsel %vm567_vm4, %v1659_v14, %v1664_v39  ;;  %v1639_v22 = vrot.slane %v1614_v34, %v3241_v55 }
 0x2bb   : > { %1671 = vst.msk [vmem:[#allocation2 + $0x4] sm:$0xf] %vm1670_vm13, %v1665_v30  ;;  %v1559_v54 = vpop.xlane.xlu1 %1558 }
 0x2bc   : > { %v1615_v37 = vmul.f32 %v2016_v53, %v1559_v54  ;;  %v1661_v60 = vsel %vm573_vm7, %v1639_v22, %v1660_v31 }
 0x2be   : > { %v1643_v38 = vrot.slane %v1615_v37, %v3241_v55 }
 0x2c0   : > { %v1662_v42 = vsel %vm575_vm8, %v1643_v38, %v1661_v60 }
 0x2c1   : > { %1669 = vst.msk [vmem:[#allocation2 - $0x4] sm:$0xf0] %vm1668_vm14, %v1662_v42 }
 0x2c8   : > { %v1672_v55 = vld [vmem:[#allocation2] sm:$0xff] }
 0x2c9   : > { %1674 = vst.msk [vmem:[%s162_s8] sm:$0xff] %vm1673_vm15, %v1672_v55 }
 0x2ca   : > { %2092 = shalt.err (!%p2089_p2)
}
 0x2cb   : > { %s2093_s27 = scalar_lea.hbm %s3318_s19, 128  ;;  %s2097_s6 = scalar_lea.hbm %s3364_s2, 256 }
 0x2cc   : > { %p2094_p4 = scmp.ne.s32.totalorder %s3318_s19, %s2093_s27  ;;  %p2098_p9 = scmp.lt.u32.totalorder %s3318_s19, %s3364_s2 }
 0x2cd   : > { %p2099_p1 = scmp.lt.u32.totalorder %s2097_s6, %s2093_s27  ;;  %p2101_p6 = scmp.lt.u32.totalorder %s2093_s27, %s3318_s19 }
 0x2ce   : > { %p2095_p5 = pnand %p2094_p4, %p3501_p11 }
 0x2cf   : > { %p2100_p3 = por %p2099_p1, %p2098_p9 }
 0x2d0   : > { %p2096_p7 = pneg %p2095_p5 }
 0x2d1   : > { %p2102_p12 = por %p2101_p6, %p2100_p3 }
 0x2d3   : > { %p2103_p13 = pnand %p2102_p12, %p2096_p7 }
 0x2d5   : > { %2106 = shalt.err (!%p2103_p13)
}
 0x2d6   : > { %1777 = dma.vmem_to_hbm [thread:$0]  (%p3501_p11), %s3320_s14, 128, %s3318_s19, %s1676_s23  }
 0x2d7 PF: > { %s1701_s3 = sand.u32 1, %s2133_s9   ;;  %p3502_p8 = scmp.ne.s32.totalorder %s3403_s22, 0 }
 0x2d8   : > { %p3503_p10 = scmp.ge.s32.totalorder %s2145_s12, 2  ;;  %s1702_s4 = scalar_lea.sflag [#allocation5], %s1701_s3 }
 0x2da   : > { %p1784_p0 = pnand %p3503_p10, %p3502_p8 }
 0x2dc   : > { %2128 = dma.done.wait (!%p1784_p0), %s1702_s4, 128  }
 0x2dd   : > { %2130 = vsyncadd (!%p1784_p0), %s1702_s4, 4294967168  ;;  %p15_p2 = scmp.ge.s32.totalorder %s2192_s15, 4   ;;  %s3504_s9 = smov %s2137_s10 }
 0x2de   : > { %s3505_s10 = smov %s2141_s11  ;;  %s3506_s11 = smov %s2204_s18 }
 0x2df   : > { %s3507_s12 = smov %s2192_s15  ;;  %17 = sbr.rel (!%p15_p2) target bundleno = 5 (0x5), region = 73 }
 0x2e6   :  { %1707 = vsyncpa [#allocation4], 1 }
 0x2e7   :  { %1709 = vsyncpa [#allocation4 + $0x1], 1 }
 0x2e8   :  { %1710 = vsyncpa [#allocation5], 1 }
 0x2e9   :  { %1712 = vsyncpa [#allocation5 + $0x1], 1 }

</bundles_post_ra>
